<compile_context>
chip_gen: v7x
topology: tpu7x:2x2x1
jax: 0.10.0
libtpu: 0.0.40
codegen_flags: <defaults>
</compile_context>

<pallas_src>
import functools
import math

import jax
import jax.numpy as jnp
from jax import lax
from jax.experimental import pallas as pl
from jax.experimental.pallas import tpu as pltpu


def _round_up(x, m):
    return ((x + m - 1) // m) * m


_LOG_EPS = math.log(1e-6)


# -----------------------------------------------------------------------------
# Fused ConvBlock1D chain kernel:
#   per layer: (x * input_mask) -> conv1d (bias-free) -> activation
#              -> masked instance-norm (optional)
# All intermediate activations live in VMEM; each conv is K bf16 MXU matmuls
# accumulated in f32 (one per tap).
# -----------------------------------------------------------------------------
def _conv_chain_kernel(*refs, cfgs, T, To):
    # refs = (x_ref, m_ref, w_0, ..., w_{L-1}, o_ref)
    #   x_ref: (1, T + 2*pad0, Cin0)   zero-padded input (channels-last)
    #   m_ref: (1, T + 2*pad0, 1)      float time-mask (zeros on halo / padding)
    #   w_l  : (K_l, Cin_l, Cout_l)    bf16 conv taps
    #   o_ref: (1, To, Cout_last)      To >= T; rows >= T written as zeros
    n_layers = len(cfgs)
    x_ref, m_ref = refs[0], refs[1]
    w_refs = refs[2:2 + n_layers]
    o_ref = refs[2 + n_layers]

    pad0 = (cfgs[0][0] - 1) // 2
    mask_halo = m_ref[0]                          # (T + 2*pad0, 1)
    mask = mask_halo[pad0:pad0 + T, :]            # (T, 1) valid-frame mask

    h = x_ref[0]                                  # (T + 2*pad0, Cin0) f32
    for li, (K, use_relu, use_norm) in enumerate(cfgs):
        w = w_refs[li]                            # Ref (K, Cin, Cout) bf16
        cin = w.shape[1]
        pad_l = (K - 1) // 2
        if li == 0:
            hin = h * mask_halo                   # halo & padded frames -> 0
        else:
            hin = h * mask                        # ConvBlock input_mask
            if pad_l > 0:
                z = jnp.zeros((pad_l, cin), hin.dtype)
                hin = jnp.concatenate([z, hin, z], axis=0)
        # conv as K tap matmuls accumulated in f32 (no lane concat / relayout).
        acc = jnp.dot(hin[0:T, :].astype(jnp.bfloat16), w[0],
                      preferred_element_type=jnp.float32)       # (T, Cout)
        for k in range(1, K):
            acc = acc + jnp.dot(hin[k:k + T, :].astype(jnp.bfloat16), w[k],
                                preferred_element_type=jnp.float32)
        if use_relu:
            acc = jnp.maximum(acc, 0.0)
        if use_norm:
            # TODO(synk): masked InstanceNorm1d (affine=False, eps=1e-5) is
            # assumed for choose_normalization(1, 'instance'); one-pass stats
            # over valid frames only.
            xm = acc * mask
            cnt = jnp.maximum(jnp.sum(mask), 1.0)
            mean = jnp.sum(xm, axis=0, keepdims=True) / cnt
            ex2 = jnp.sum(xm * xm, axis=0, keepdims=True) / cnt
            var = ex2 - mean * mean
            acc = (acc - mean) * lax.rsqrt(var + 1e-5) * mask
        h = acc                                   # (T, Cout) f32
    if To > T:
        h = jnp.concatenate(
            [h, jnp.zeros((To - T, h.shape[1]), h.dtype)], axis=0)
    o_ref[0] = h.astype(o_ref.dtype)


def conv_chain(x, mask, weights, layer_cfgs, *, out_time=None):
    """Fused ConvBlock1D chain.

    x: (B, T, Cin) f32, mask: (B, T, 1) f32,
    weights: list of (K_l, Cin_l, Cout_l) f32,
    layer_cfgs: tuple of (use_relu, use_norm) per layer.
    Returns (B, out_time or T, Cout_last) f32 (rows >= T are zero).
    """
    B, T, Cin = x.shape
    Ks = tuple(int(w.shape[0]) for w in weights)
    cfgs = tuple((Ks[i],) + tuple(layer_cfgs[i]) for i in range(len(weights)))
    pad0 = (Ks[0] - 1) // 2
    Tp = T + 2 * pad0
    xp = jnp.pad(x, ((0, 0), (pad0, pad0), (0, 0))) if pad0 else x
    mp = jnp.pad(mask, ((0, 0), (pad0, pad0), (0, 0))) if pad0 else mask
    # bf16 weights once outside the kernel (halves weight DMA, no in-kernel cast)
    wbs = [w.astype(jnp.bfloat16) for w in weights]
    Cout = wbs[-1].shape[2]
    To = T if out_time is None else int(out_time)

    kern = functools.partial(_conv_chain_kernel, cfgs=cfgs, T=T, To=To)
    in_specs = [
        pl.BlockSpec((1, Tp, Cin), lambda b: (b, 0, 0)),
        pl.BlockSpec((1, Tp, 1), lambda b: (b, 0, 0)),
    ] + [pl.BlockSpec(w.shape, lambda b: (0, 0, 0)) for w in wbs]

    # TODO(synk): for very long T, tile T on the grid with a halo (two-pass
    # masked instance-norm stats); grid=(B,) keeps the full chain in VMEM and
    # leaves one v7x TensorCore idle when B == 1.
    return pl.pallas_call(
        kern,
        out_shape=jax.ShapeDtypeStruct((B, To, Cout), jnp.float32),
        grid=(B,),
        in_specs=in_specs,
        out_specs=pl.BlockSpec((1, To, Cout), lambda b: (b, 0, 0)),
        compiler_params=pltpu.CompilerParams(
            dimension_semantics=("parallel",)),
    )(xp, mp, *wbs)


# -----------------------------------------------------------------------------
# Attention core kernel: Q K^T, diagonal prior, log_softmax, masked softmax.
# Single exp-per-tile softmax; T1 tiled on the grid; K block reused across T1
# tiles; outputs written at exactly (B, T1, T2) (no post-kernel slice).
# -----------------------------------------------------------------------------
def _attention_kernel(klen_ref, qlen_ref, q_ref, k_ref, attn_ref, logits_ref, *,
                      gamma, threshold, t2_valid, tq_tile):
    b = pl.program_id(0)
    ti = pl.program_id(1)
    tq = q_ref.shape[1]
    T2p = k_ref.shape[1]

    klen = klen_ref[b]
    qlen = qlen_ref[b]
    inv_klen = 1.0 / jnp.maximum(klen, 1).astype(jnp.float32)
    inv_qlen = 1.0 / jnp.maximum(qlen, 1).astype(jnp.float32)

    # --- MXU: s = Q . K^T (attention scale pre-folded into the query conv).
    qb = q_ref[0].astype(jnp.bfloat16)                        # (tq, D)
    kb = k_ref[0].astype(jnp.bfloat16)                        # (T2p, D)
    s = lax.dot_general(qb, kb, dimension_numbers=(((1,), (1,)), ((), ())),
                        preferred_element_type=jnp.float32)   # (tq, T2p)

    # --- 1-D index / mask vectors (O(tq + T2p) work, broadcast into the tile).
    row = ti * tq_tile + lax.broadcasted_iota(jnp.int32, (tq, 1), 0)   # (tq,1)
    col = lax.broadcasted_iota(jnp.int32, (1, T2p), 1)                 # (1,T2p)
    qmask = (row < qlen).astype(jnp.float32)                           # (tq,1)
    kmask = (col < klen).astype(jnp.float32)                           # (1,T2p)
    col_bias = jnp.where(col < t2_valid, 0.0, -jnp.inf)                # pad cols
    row_pos = row.astype(jnp.float32) * inv_qlen                       # (tq,1)
    col_pos = col.astype(jnp.float32) * inv_klen                       # (1,T2p)

    # --- diagonal prior (normalize -> threshold), analytic log-prior.
    g = col_pos - row_pos                                     # (tq, T2p)
    neg_half_g2 = (g * g) * (-0.5 / (gamma * gamma))
    prior = jnp.exp(neg_half_g2) * (kmask * qmask)
    rowsum = jnp.sum(prior, axis=-1, keepdims=True) + 1e-5    # (tq, 1)
    prior_n = prior * pl.reciprocal(rowsum, approx=True)
    kept = prior_n >= threshold
    prior_t = jnp.where(kept, prior_n, 0.0)
    # log(prior_t + 1e-6) taken analytically (only a (tq,1) log); deviates from
    # the exact value by <= ~1e-2 only for entries sitting right at `threshold`.
    log_prior = jnp.where(kept, neg_half_g2 - jnp.log(rowsum), _LOG_EPS)

    # --- log_softmax over the real key columns (single exp, reused below).
    s_v = s + col_bias
    smax = jnp.max(s_v, axis=-1, keepdims=True)
    e = jnp.exp(s_v - smax)                                   # zero on pad cols
    lse = jnp.log(jnp.sum(e, axis=-1, keepdims=True)) + smax  # (tq, 1)
    log_attn = s - lse + log_prior
    logits_ref[0] = log_attn[:, :t2_valid].astype(logits_ref.dtype)

    # --- softmax(masked_fill(log_attn, col >= klen, min)) * (kmask & qmask)
    #     == normalize(e * (prior_t + 1e-6) * kmask) * qmask   (lse cancels)
    n = e * (prior_t + 1e-6) * kmask
    denom = jnp.maximum(jnp.sum(n, axis=-1, keepdims=True), 1e-30)   # (tq, 1)
    p = n * (1.0 / denom) * qmask      # reciprocal on the (tq,1) vector only
    attn_ref[0] = p[:, :t2_valid].astype(attn_ref.dtype)


def conv_attention_core(q_enc, k_enc, query_len, key_len, *, T1, T2, tq,
                        gamma=0.1, threshold=1e-4):
    """q_enc: (B, T1p, D) (scale pre-folded, zero rows >= T1),
    k_enc: (B, T2p, D) (zero rows >= T2, T2p multiple of 128).
    Returns attn, logits of exact shape (B, T1, T2) f32."""
    B, T1p, D = q_enc.shape
    _, T2p, _ = k_enc.shape
    nt1 = T1p // tq

    kern = functools.partial(_attention_kernel, gamma=gamma,
                             threshold=threshold, t2_valid=T2, tq_tile=tq)
    grid_spec = pltpu.PrefetchScalarGridSpec(
        num_scalar_prefetch=2,               # key_len, query_len land in SMEM
        grid=(B, nt1),
        in_specs=[
            pl.BlockSpec((1, tq, D), lambda b, t, kl, ql: (b, t, 0)),
            pl.BlockSpec((1, T2p, D), lambda b, t, kl, ql: (b, 0, 0)),
        ],
        out_specs=[
            pl.BlockSpec((1, tq, T2), lambda b, t, kl, ql: (b, t, 0)),
            pl.BlockSpec((1, tq, T2), lambda b, t, kl, ql: (b, t, 0)),
        ],
    )
    attn, logits = pl.pallas_call(
        kern,
        grid_spec=grid_spec,
        out_shape=(jax.ShapeDtypeStruct((B, T1, T2), jnp.float32),
                   jax.ShapeDtypeStruct((B, T1, T2), jnp.float32)),
        compiler_params=pltpu.CompilerParams(
            dimension_semantics=("parallel", "parallel"),
            vmem_limit_bytes=64 * 1024 * 1024),
    )(key_len, query_len, q_enc, k_enc)
    return attn, logits


# -----------------------------------------------------------------------------
# Parameter init + full forward (glue)
# -----------------------------------------------------------------------------
def init_conv_attention_params(rng, mel_dim, text_dim, attention_dim,
                               key_kernel_size=3, query_kernel_size=(3, 3)):
    def w(rng, k, cin, cout):
        bound = 1.0 / (float(cin * k) ** 0.5)     # PyTorch Conv1d default init
        return jax.random.uniform(rng, (k, cin, cout), jnp.float32,
                                  -bound, bound)
    ks = jax.random.split(rng, 5)
    return {
        "key_proj": [
            w(ks[0], key_kernel_size, text_dim, text_dim * 2),
            w(ks[1], 1, text_dim * 2, attention_dim),
        ],
        "query_proj": [
            w(ks[2], query_kernel_size[0], mel_dim, mel_dim * 2),
            w(ks[3], query_kernel_size[1], mel_dim * 2, mel_dim),
            w(ks[4], 1, mel_dim, attention_dim),
        ],
    }


def conv_attention_forward(params, queries, keys, query_len, key_len,
                           attention_dim):
    """queries: (B, mel_dim, T1), keys: (B, text_dim, T2) -- PyTorch NCT."""
    B, _, T1 = queries.shape
    _, _, T2 = keys.shape
    scale = float(attention_dim) ** -0.5

    q = jnp.transpose(queries, (0, 2, 1)).astype(jnp.float32)   # (B, T1, mel)
    k = jnp.transpose(keys, (0, 2, 1)).astype(jnp.float32)      # (B, T2, text)
    query_len = query_len.astype(jnp.int32)
    key_len = key_len.astype(jnp.int32)

    qmask = (jnp.arange(T1)[None, :] < query_len[:, None]
             ).astype(jnp.float32)[..., None]                   # (B, T1, 1)
    kmask = (jnp.arange(T2)[None, :] < key_len[:, None]
             ).astype(jnp.float32)[..., None]                   # (B, T2, 1)

    # Tiling decided here so the conv chains emit already time-padded encodings
    # and the attention wrapper needs no extra pad / slice HBM passes.
    T2p = _round_up(T2, 128)                  # lane-dense K / attention math
    tq = 128 if T2p <= 2048 else 64           # bound (tq,T2p) live set (v7x VMEM)
    tq = min(tq, _round_up(T1, 8))
    T1p = _round_up(T1, tq)

    # Fold the attention scale into the (linear) last query projection.
    q_weights = list(params["query_proj"])
    q_weights[-1] = q_weights[-1] * scale

    # Note: every ConvBlock1D in the module is built with bias=False, so the
    # bias-free convs match the reference.
    k_enc = conv_chain(k, kmask, params["key_proj"],
                       layer_cfgs=((True, True), (False, False)),
                       out_time=T2p)                             # (B, T2p, D)
    q_enc = conv_chain(q, qmask, q_weights,
                       layer_cfgs=((True, True), (True, True), (False, False)),
                       out_time=T1p)                             # (B, T1p, D)

    return conv_attention_core(q_enc, k_enc, query_len, key_len,
                               T1=T1, T2=T2, tq=tq)


# -----------------------------------------------------------------------------
# Pure-JAX f32 reference (mirrors the PyTorch module; masked inst-norm assumed)
# -----------------------------------------------------------------------------
def _conv1d_ref(x, w):
    # x: (B, Cin, T); w: (K, Cin, Cout); 'same' zero padding, no bias.
    K = w.shape[0]
    pad = (K - 1) // 2
    T = x.shape[-1]
    xp = jnp.pad(x, ((0, 0), (0, 0), (pad, pad)))
    y = 0.0
    for k in range(K):
        y = y + jnp.einsum("bct,co->bot", xp[:, :, k:k + T], w[k])
    return y


def _reference_forward(params, queries, keys, query_len, key_len,
                       attention_dim):
    scale = float(attention_dim) ** -0.5
    B, _, T1 = queries.shape
    _, _, T2 = keys.shape
    qlen_f = query_len.astype(jnp.float32)
    klen_f = key_len.astype(jnp.float32)
    qmask = (jnp.arange(T1)[None, :] < query_len[:, None]).astype(jnp.float32)
    kmask = (jnp.arange(T2)[None, :] < key_len[:, None]).astype(jnp.float32)

    def block(x, w, mask, relu, norm):
        x = x * mask[:, None, :]
        y = _conv1d_ref(x, w)
        if relu:
            y = jnp.maximum(y, 0.0)
        if norm:
            m = mask[:, None, :]
            cnt = jnp.sum(m, axis=-1, keepdims=True)
            mean = jnp.sum(y * m, axis=-1, keepdims=True) / cnt
            var = jnp.sum(((y - mean) ** 2) * m, axis=-1, keepdims=True) / cnt
            y = (y - mean) / jnp.sqrt(var + 1e-5) * m
        return y

    k_enc = keys.astype(jnp.float32)
    for w, (r, n) in zip(params["key_proj"], ((True, True), (False, False))):
        k_enc = block(k_enc, w, kmask, r, n)
    q_enc = queries.astype(jnp.float32)
    for w, (r, n) in zip(params["query_proj"],
                         ((True, True), (True, True), (False, False))):
        q_enc = block(q_enc, w, qmask, r, n)

    s = scale * jnp.einsum("bdq,bdk->bqk", q_enc, k_enc)
    g = (jnp.arange(T2, dtype=jnp.float32)[None, None, :]
         / klen_f[:, None, None]
         - jnp.arange(T1, dtype=jnp.float32)[None, :, None]
         / qlen_f[:, None, None])
    prior = jnp.exp(-(g ** 2) / (2.0 * 0.1 ** 2))
    prior = prior * kmask[:, None, :] * qmask[:, :, None]
    prior = prior / (jnp.sum(prior, axis=-1, keepdims=True) + 1e-5)
    prior = jnp.where(prior < 1e-4, 0.0, prior)
    logits = jax.nn.log_softmax(s, axis=2) + jnp.log(prior + 1e-6)
    masked = jnp.where(kmask[:, None, :] > 0, logits,
                       jnp.finfo(jnp.float32).min)
    attn = jax.nn.softmax(masked, axis=2)
    attn = attn * kmask[:, None, :] * qmask[:, :, None]
    return attn, logits


if __name__ == "__main__":
    B = 2
    mel_dim = 16
    text_dim = 32
    attention_dim = 32
    T1 = 16     # mel frames
    T2 = 12     # text tokens

    root = jax.random.PRNGKey(0)
    kp, kq, kk = jax.random.split(root, 3)
    params = init_conv_attention_params(kp, mel_dim, text_dim, attention_dim)

    queries = jax.random.normal(kq, (B, mel_dim, T1), jnp.float32)
    keys = jax.random.normal(kk, (B, text_dim, T2), jnp.float32)
    query_len = jnp.array([T1, 11], dtype=jnp.int32)
    key_len = jnp.array([T2, 9], dtype=jnp.int32)

    fwd = jax.jit(functools.partial(conv_attention_forward,
                                    attention_dim=attention_dim))
    attn, attn_logits = fwd(params, queries, keys, query_len, key_len)
    jax.block_until_ready((attn, attn_logits))

    assert attn.shape == (B, T1, T2) and attn_logits.shape == (B, T1, T2)
    assert bool(jnp.all(jnp.isfinite(attn)))
    # valid rows of `attn` sum to ~1 over the key axis (batch 0 is full-length)
    row_sums = jnp.sum(attn[0], axis=-1)
    assert bool(jnp.all(jnp.abs(row_sums - 1.0) < 1e-3))

    # loose check against a pure-JAX f32 mirror of the module (bf16 MXU
    # operands + analytic log-prior introduce small deviations)
    attn_ref, _ = _reference_forward(params, queries, keys,
                                     query_len, key_len, attention_dim)
    max_diff = float(jnp.max(jnp.abs(attn - attn_ref)))
    assert max_diff < 5e-2, f"attn mismatch vs reference: {max_diff}"

    print("KERNEL_OK")
</pallas_src>

<mosaic_0001>
module attributes {stable_mosaic.version = 11 : i64} {
  func.func @_conv_chain_kernel(%arg0: i32, %arg1: memref<1x14x32xf32, #tpu.memory_space<vmem>>, %arg2: memref<1x14x1xf32, #tpu.memory_space<vmem>>, %arg3: memref<3x32x64xbf16, #tpu.memory_space<vmem>>, %arg4: memref<1x64x32xbf16, #tpu.memory_space<vmem>>, %arg5: memref<1x128x32xf32, #tpu.memory_space<vmem>>) attributes {dimension_semantics = [#tpu.dimension_semantics<parallel>], iteration_bounds = array<i64: 2>, scalar_prefetch = 0 : i64, scratch_operands = 0 : i64, tpu.core_type = #tpu.core_type<tc>, window_params = [{transform_indices = @transform_0, window_bounds = array<i64: 1, 14, 32>}, {transform_indices = @transform_1, window_bounds = array<i64: 1, 14, 1>}, {pipeline_mode = #tpu.pipeline_mode<synchronous>, transform_indices = @transform_2, window_bounds = array<i64: 3, 32, 64>}, {pipeline_mode = #tpu.pipeline_mode<synchronous>, transform_indices = @transform_3, window_bounds = array<i64: 1, 64, 32>}, {transform_indices = @transform_4, window_bounds = array<i64: 1, 128, 32>}]} {
    %c0 = arith.constant 0 : index
    %c0_0 = arith.constant 0 : index
    %c0_1 = arith.constant 0 : index
    %0 = vector.load %arg2[%c0, %c0_0, %c0_1] : memref<1x14x1xf32, #tpu.memory_space<vmem>>, vector<1x14x1xf32>
    %1 = vector.shape_cast %0 : vector<1x14x1xf32> to vector<14x1xf32>
    %2 = vector.extract_strided_slice %1 {offsets = [1, 0], sizes = [12, 1], strides = [1, 1]} : vector<14x1xf32> to vector<12x1xf32>
    %c0_2 = arith.constant 0 : index
    %c0_3 = arith.constant 0 : index
    %c0_4 = arith.constant 0 : index
    %3 = vector.load %arg1[%c0_2, %c0_3, %c0_4] : memref<1x14x32xf32, #tpu.memory_space<vmem>>, vector<1x14x32xf32>
    %4 = vector.shape_cast %3 : vector<1x14x32xf32> to vector<14x32xf32>
    %5 = vector.broadcast %1 : vector<14x1xf32> to vector<14x32xf32>
    %6 = arith.mulf %4, %5 : vector<14x32xf32>
    %7 = vector.extract_strided_slice %6 {offsets = [0, 0], sizes = [12, 32], strides = [1, 1]} : vector<14x32xf32> to vector<12x32xf32>
    %8 = arith.truncf %7 : vector<12x32xf32> to vector<12x32xbf16>
    %c0_5 = arith.constant 0 : index
    %c0_6 = arith.constant 0 : index
    %c0_7 = arith.constant 0 : index
    %9 = vector.load %arg3[%c0_5, %c0_6, %c0_7] : memref<3x32x64xbf16, #tpu.memory_space<vmem>>, vector<1x32x64xbf16>
    %10 = vector.shape_cast %9 : vector<1x32x64xbf16> to vector<32x64xbf16>
    %cst = arith.constant dense<0.000000e+00> : vector<12x64xf32>
    %11 = tpu.matmul %8, %10, %cst {dimension_numbers = #tpu.dot_dimension_numbers<[1], [0], [0], [1], [0, 0, 1, 1], [], []>} : vector<12x32xbf16>, vector<32x64xbf16>, vector<12x64xf32> -> vector<12x64xf32>
    %12 = vector.extract_strided_slice %6 {offsets = [1, 0], sizes = [12, 32], strides = [1, 1]} : vector<14x32xf32> to vector<12x32xf32>
    %13 = arith.truncf %12 : vector<12x32xf32> to vector<12x32xbf16>
    %c1 = arith.constant 1 : index
    %c0_8 = arith.constant 0 : index
    %c0_9 = arith.constant 0 : index
    %14 = vector.load %arg3[%c1, %c0_8, %c0_9] : memref<3x32x64xbf16, #tpu.memory_space<vmem>>, vector<1x32x64xbf16>
    %15 = vector.shape_cast %14 : vector<1x32x64xbf16> to vector<32x64xbf16>
    %cst_10 = arith.constant dense<0.000000e+00> : vector<12x64xf32>
    %16 = tpu.matmul %13, %15, %cst_10 {dimension_numbers = #tpu.dot_dimension_numbers<[1], [0], [0], [1], [0, 0, 1, 1], [], []>} : vector<12x32xbf16>, vector<32x64xbf16>, vector<12x64xf32> -> vector<12x64xf32>
    %17 = arith.addf %11, %16 : vector<12x64xf32>
    %18 = vector.extract_strided_slice %6 {offsets = [2, 0], sizes = [12, 32], strides = [1, 1]} : vector<14x32xf32> to vector<12x32xf32>
    %19 = arith.truncf %18 : vector<12x32xf32> to vector<12x32xbf16>
    %c2 = arith.constant 2 : index
    %c0_11 = arith.constant 0 : index
    %c0_12 = arith.constant 0 : index
    %20 = vector.load %arg3[%c2, %c0_11, %c0_12] : memref<3x32x64xbf16, #tpu.memory_space<vmem>>, vector<1x32x64xbf16>
    %21 = vector.shape_cast %20 : vector<1x32x64xbf16> to vector<32x64xbf16>
    %cst_13 = arith.constant dense<0.000000e+00> : vector<12x64xf32>
    %22 = tpu.matmul %19, %21, %cst_13 {dimension_numbers = #tpu.dot_dimension_numbers<[1], [0], [0], [1], [0, 0, 1, 1], [], []>} : vector<12x32xbf16>, vector<32x64xbf16>, vector<12x64xf32> -> vector<12x64xf32>
    %23 = arith.addf %17, %22 : vector<12x64xf32>
    %cst_14 = arith.constant 0.000000e+00 : f32
    %24 = vector.broadcast %cst_14 : f32 to vector<12x64xf32>
    %25 = arith.maximumf %23, %24 : vector<12x64xf32>
    %26 = vector.broadcast %2 : vector<12x1xf32> to vector<12x64xf32>
    %27 = arith.mulf %25, %26 : vector<12x64xf32>
    %28 = vector.shape_cast %2 : vector<12x1xf32> to vector<1x12x1xf32>
    %cst_15 = arith.constant dense<0.000000e+00> : vector<1xf32>
    %29 = vector.multi_reduction <add>, %28, %cst_15 [1, 2] : vector<1x12x1xf32> to vector<1xf32>
    %30 = vector.shape_cast %29 : vector<1xf32> to vector<1x1x1xf32>
    %31 = vector.extract %30[0, 0, 0] : f32 from vector<1x1x1xf32>
    %cst_16 = arith.constant 1.000000e+00 : f32
    %32 = arith.maximumf %31, %cst_16 : f32
    %cst_17 = arith.constant dense<0.000000e+00> : vector<64xf32>
    %33 = vector.multi_reduction <add>, %27, %cst_17 [0] : vector<12x64xf32> to vector<64xf32>
    %34 = vector.shape_cast %33 : vector<64xf32> to vector<1x64xf32>
    %35 = vector.broadcast %32 : f32 to vector<1x64xf32>
    %36 = arith.divf %34, %35 : vector<1x64xf32>
    %37 = arith.mulf %27, %27 : vector<12x64xf32>
    %cst_18 = arith.constant dense<0.000000e+00> : vector<64xf32>
    %38 = vector.multi_reduction <add>, %37, %cst_18 [0] : vector<12x64xf32> to vector<64xf32>
    %39 = vector.shape_cast %38 : vector<64xf32> to vector<1x64xf32>
    %40 = vector.broadcast %32 : f32 to vector<1x64xf32>
    %41 = arith.divf %39, %40 : vector<1x64xf32>
    %42 = arith.mulf %36, %36 : vector<1x64xf32>
    %43 = arith.subf %41, %42 : vector<1x64xf32>
    %44 = vector.broadcast %36 : vector<1x64xf32> to vector<12x64xf32>
    %45 = arith.subf %25, %44 : vector<12x64xf32>
    %cst_19 = arith.constant 9.99999974E-6 : f32
    %46 = vector.broadcast %cst_19 : f32 to vector<1x64xf32>
    %47 = arith.addf %43, %46 : vector<1x64xf32>
    %48 = math.rsqrt %47 : vector<1x64xf32>
    %49 = vector.broadcast %48 : vector<1x64xf32> to vector<12x64xf32>
    %50 = arith.mulf %45, %49 : vector<12x64xf32>
    %51 = vector.broadcast %2 : vector<12x1xf32> to vector<12x64xf32>
    %52 = arith.mulf %50, %51 : vector<12x64xf32>
    %53 = vector.broadcast %2 : vector<12x1xf32> to vector<12x64xf32>
    %54 = arith.mulf %52, %53 : vector<12x64xf32>
    %55 = arith.truncf %54 : vector<12x64xf32> to vector<12x64xbf16>
    %c0_20 = arith.constant 0 : index
    %c0_21 = arith.constant 0 : index
    %c0_22 = arith.constant 0 : index
    %56 = vector.load %arg4[%c0_20, %c0_21, %c0_22] : memref<1x64x32xbf16, #tpu.memory_space<vmem>>, vector<1x64x32xbf16>
    %57 = vector.shape_cast %56 : vector<1x64x32xbf16> to vector<64x32xbf16>
    %cst_23 = arith.constant dense<0.000000e+00> : vector<12x32xf32>
    %58 = tpu.matmul %55, %57, %cst_23 {dimension_numbers = #tpu.dot_dimension_numbers<[1], [0], [0], [1], [0, 0, 1, 1], [], []>} : vector<12x64xbf16>, vector<64x32xbf16>, vector<12x32xf32> -> vector<12x32xf32>
    %cst_24 = arith.constant 0.000000e+00 : f32
    %59 = vector.broadcast %cst_24 : f32 to vector<116x32xf32>
    %60 = tpu.concatenate %58, %59 in 0 : vector<12x32xf32>, vector<116x32xf32> -> vector<128x32xf32>
    %c0_25 = arith.constant 0 : index
    %c0_26 = arith.constant 0 : index
    %c0_27 = arith.constant 0 : index
    %61 = vector.load %arg5[%c0_25, %c0_26, %c0_27] : memref<1x128x32xf32, #tpu.memory_space<vmem>>, vector<1x128x32xf32>
    %62 = vector.shape_cast %61 : vector<1x128x32xf32> to vector<128x32xf32>
    %63 = vector.shape_cast %60 : vector<128x32xf32> to vector<1x128x32xf32>
    tpu.vector_store %arg5[%c0_25, %c0_26, %c0_27], %63 {strides = array<i32>} : memref<1x128x32xf32, #tpu.memory_space<vmem>>, vector<1x128x32xf32>,
    return
  }
  func.func @transform_0(%arg0: i32) -> (i32, i32, i32) {
    %c0_i32 = arith.constant 0 : i32
    %c0_i32_0 = arith.constant 0 : i32
    %c0_i32_1 = arith.constant 0 : i32
    return %arg0, %c0_i32, %c0_i32_0 : i32, i32, i32
  }
  func.func @transform_1(%arg0: i32) -> (i32, i32, i32) {
    %c0_i32 = arith.constant 0 : i32
    %c0_i32_0 = arith.constant 0 : i32
    %c0_i32_1 = arith.constant 0 : i32
    return %arg0, %c0_i32, %c0_i32_0 : i32, i32, i32
  }
  func.func @transform_2(%arg0: i32) -> (i32, i32, i32) {
    %c0_i32 = arith.constant 0 : i32
    %c0_i32_0 = arith.constant 0 : i32
    %c0_i32_1 = arith.constant 0 : i32
    %c0_i32_2 = arith.constant 0 : i32
    return %c0_i32, %c0_i32_0, %c0_i32_1 : i32, i32, i32
  }
  func.func @transform_3(%arg0: i32) -> (i32, i32, i32) {
    %c0_i32 = arith.constant 0 : i32
    %c0_i32_0 = arith.constant 0 : i32
    %c0_i32_1 = arith.constant 0 : i32
    %c0_i32_2 = arith.constant 0 : i32
    return %c0_i32, %c0_i32_0, %c0_i32_1 : i32, i32, i32
  }
  func.func @transform_4(%arg0: i32) -> (i32, i32, i32) {
    %c0_i32 = arith.constant 0 : i32
    %c0_i32_0 = arith.constant 0 : i32
    %c0_i32_1 = arith.constant 0 : i32
    return %arg0, %c0_i32, %c0_i32_0 : i32, i32, i32
  }
}

module attributes {stable_mosaic.version = 11 : i64} {
  func.func @_conv_chain_kernel(%arg0: i32, %arg1: memref<1x18x16xf32, #tpu.memory_space<vmem>>, %arg2: memref<1x18x1xf32, #tpu.memory_space<vmem>>, %arg3: memref<3x16x32xbf16, #tpu.memory_space<vmem>>, %arg4: memref<3x32x16xbf16, #tpu.memory_space<vmem>>, %arg5: memref<1x16x32xbf16, #tpu.memory_space<vmem>>, %arg6: memref<1x16x32xf32, #tpu.memory_space<vmem>>) attributes {dimension_semantics = [#tpu.dimension_semantics<parallel>], iteration_bounds = array<i64: 2>, scalar_prefetch = 0 : i64, scratch_operands = 0 : i64, tpu.core_type = #tpu.core_type<tc>, window_params = [{transform_indices = @transform_0, window_bounds = array<i64: 1, 18, 16>}, {transform_indices = @transform_1, window_bounds = array<i64: 1, 18, 1>}, {pipeline_mode = #tpu.pipeline_mode<synchronous>, transform_indices = @transform_2, window_bounds = array<i64: 3, 16, 32>}, {pipeline_mode = #tpu.pipeline_mode<synchronous>, transform_indices = @transform_3, window_bounds = array<i64: 3, 32, 16>}, {pipeline_mode = #tpu.pipeline_mode<synchronous>, transform_indices = @transform_4, window_bounds = array<i64: 1, 16, 32>}, {transform_indices = @transform_5, window_bounds = array<i64: 1, 16, 32>}]} {
    %c0 = arith.constant 0 : index
    %c0_0 = arith.constant 0 : index
    %c0_1 = arith.constant 0 : index
    %0 = vector.load %arg2[%c0, %c0_0, %c0_1] : memref<1x18x1xf32, #tpu.memory_space<vmem>>, vector<1x18x1xf32>
    %1 = vector.shape_cast %0 : vector<1x18x1xf32> to vector<18x1xf32>
    %2 = vector.extract_strided_slice %1 {offsets = [1, 0], sizes = [16, 1], strides = [1, 1]} : vector<18x1xf32> to vector<16x1xf32>
    %c0_2 = arith.constant 0 : index
    %c0_3 = arith.constant 0 : index
    %c0_4 = arith.constant 0 : index
    %3 = vector.load %arg1[%c0_2, %c0_3, %c0_4] : memref<1x18x16xf32, #tpu.memory_space<vmem>>, vector<1x18x16xf32>
    %4 = vector.shape_cast %3 : vector<1x18x16xf32> to vector<18x16xf32>
    %5 = vector.broadcast %1 : vector<18x1xf32> to vector<18x16xf32>
    %6 = arith.mulf %4, %5 : vector<18x16xf32>
    %7 = vector.extract_strided_slice %6 {offsets = [0, 0], sizes = [16, 16], strides = [1, 1]} : vector<18x16xf32> to vector<16x16xf32>
    %8 = arith.truncf %7 : vector<16x16xf32> to vector<16x16xbf16>
    %c0_5 = arith.constant 0 : index
    %c0_6 = arith.constant 0 : index
    %c0_7 = arith.constant 0 : index
    %9 = vector.load %arg3[%c0_5, %c0_6, %c0_7] : memref<3x16x32xbf16, #tpu.memory_space<vmem>>, vector<1x16x32xbf16>
    %10 = vector.shape_cast %9 : vector<1x16x32xbf16> to vector<16x32xbf16>
    %cst = arith.constant dense<0.000000e+00> : vector<16x32xf32>
    %11 = tpu.matmul %8, %10, %cst {dimension_numbers = #tpu.dot_dimension_numbers<[1], [0], [0], [1], [0, 0, 1, 1], [], []>} : vector<16x16xbf16>, vector<16x32xbf16>, vector<16x32xf32> -> vector<16x32xf32>
    %12 = vector.extract_strided_slice %6 {offsets = [1, 0], sizes = [16, 16], strides = [1, 1]} : vector<18x16xf32> to vector<16x16xf32>
    %13 = arith.truncf %12 : vector<16x16xf32> to vector<16x16xbf16>
    %c1 = arith.constant 1 : index
    %c0_8 = arith.constant 0 : index
    %c0_9 = arith.constant 0 : index
    %14 = vector.load %arg3[%c1, %c0_8, %c0_9] : memref<3x16x32xbf16, #tpu.memory_space<vmem>>, vector<1x16x32xbf16>
    %15 = vector.shape_cast %14 : vector<1x16x32xbf16> to vector<16x32xbf16>
    %cst_10 = arith.constant dense<0.000000e+00> : vector<16x32xf32>
    %16 = tpu.matmul %13, %15, %cst_10 {dimension_numbers = #tpu.dot_dimension_numbers<[1], [0], [0], [1], [0, 0, 1, 1], [], []>} : vector<16x16xbf16>, vector<16x32xbf16>, vector<16x32xf32> -> vector<16x32xf32>
    %17 = arith.addf %11, %16 : vector<16x32xf32>
    %18 = vector.extract_strided_slice %6 {offsets = [2, 0], sizes = [16, 16], strides = [1, 1]} : vector<18x16xf32> to vector<16x16xf32>
    %19 = arith.truncf %18 : vector<16x16xf32> to vector<16x16xbf16>
    %c2 = arith.constant 2 : index
    %c0_11 = arith.constant 0 : index
    %c0_12 = arith.constant 0 : index
    %20 = vector.load %arg3[%c2, %c0_11, %c0_12] : memref<3x16x32xbf16, #tpu.memory_space<vmem>>, vector<1x16x32xbf16>
    %21 = vector.shape_cast %20 : vector<1x16x32xbf16> to vector<16x32xbf16>
    %cst_13 = arith.constant dense<0.000000e+00> : vector<16x32xf32>
    %22 = tpu.matmul %19, %21, %cst_13 {dimension_numbers = #tpu.dot_dimension_numbers<[1], [0], [0], [1], [0, 0, 1, 1], [], []>} : vector<16x16xbf16>, vector<16x32xbf16>, vector<16x32xf32> -> vector<16x32xf32>
    %23 = arith.addf %17, %22 : vector<16x32xf32>
    %cst_14 = arith.constant 0.000000e+00 : f32
    %24 = vector.broadcast %cst_14 : f32 to vector<16x32xf32>
    %25 = arith.maximumf %23, %24 : vector<16x32xf32>
    %26 = vector.broadcast %2 : vector<16x1xf32> to vector<16x32xf32>
    %27 = arith.mulf %25, %26 : vector<16x32xf32>
    %28 = vector.shape_cast %2 : vector<16x1xf32> to vector<1x16x1xf32>
    %cst_15 = arith.constant dense<0.000000e+00> : vector<1xf32>
    %29 = vector.multi_reduction <add>, %28, %cst_15 [1, 2] : vector<1x16x1xf32> to vector<1xf32>
    %30 = vector.shape_cast %29 : vector<1xf32> to vector<1x1x1xf32>
    %31 = vector.extract %30[0, 0, 0] : f32 from vector<1x1x1xf32>
    %cst_16 = arith.constant 1.000000e+00 : f32
    %32 = arith.maximumf %31, %cst_16 : f32
    %cst_17 = arith.constant dense<0.000000e+00> : vector<32xf32>
    %33 = vector.multi_reduction <add>, %27, %cst_17 [0] : vector<16x32xf32> to vector<32xf32>
    %34 = vector.shape_cast %33 : vector<32xf32> to vector<1x32xf32>
    %35 = vector.broadcast %32 : f32 to vector<1x32xf32>
    %36 = arith.divf %34, %35 : vector<1x32xf32>
    %37 = arith.mulf %27, %27 : vector<16x32xf32>
    %cst_18 = arith.constant dense<0.000000e+00> : vector<32xf32>
    %38 = vector.multi_reduction <add>, %37, %cst_18 [0] : vector<16x32xf32> to vector<32xf32>
    %39 = vector.shape_cast %38 : vector<32xf32> to vector<1x32xf32>
    %40 = vector.broadcast %32 : f32 to vector<1x32xf32>
    %41 = arith.divf %39, %40 : vector<1x32xf32>
    %42 = arith.mulf %36, %36 : vector<1x32xf32>
    %43 = arith.subf %41, %42 : vector<1x32xf32>
    %44 = vector.broadcast %36 : vector<1x32xf32> to vector<16x32xf32>
    %45 = arith.subf %25, %44 : vector<16x32xf32>
    %cst_19 = arith.constant 9.99999974E-6 : f32
    %46 = vector.broadcast %cst_19 : f32 to vector<1x32xf32>
    %47 = arith.addf %43, %46 : vector<1x32xf32>
    %48 = math.rsqrt %47 : vector<1x32xf32>
    %49 = vector.broadcast %48 : vector<1x32xf32> to vector<16x32xf32>
    %50 = arith.mulf %45, %49 : vector<16x32xf32>
    %51 = vector.broadcast %2 : vector<16x1xf32> to vector<16x32xf32>
    %52 = arith.mulf %50, %51 : vector<16x32xf32>
    %53 = vector.broadcast %2 : vector<16x1xf32> to vector<16x32xf32>
    %54 = arith.mulf %52, %53 : vector<16x32xf32>
    %cst_20 = arith.constant 0.000000e+00 : f32
    %55 = vector.broadcast %cst_20 : f32 to vector<1x32xf32>
    %56 = tpu.concatenate %55, %54, %55 in 0 : vector<1x32xf32>, vector<16x32xf32>, vector<1x32xf32> -> vector<18x32xf32>
    %57 = vector.extract_strided_slice %56 {offsets = [0, 0], sizes = [16, 32], strides = [1, 1]} : vector<18x32xf32> to vector<16x32xf32>
    %58 = arith.truncf %57 : vector<16x32xf32> to vector<16x32xbf16>
    %c0_21 = arith.constant 0 : index
    %c0_22 = arith.constant 0 : index
    %c0_23 = arith.constant 0 : index
    %59 = vector.load %arg4[%c0_21, %c0_22, %c0_23] : memref<3x32x16xbf16, #tpu.memory_space<vmem>>, vector<1x32x16xbf16>
    %60 = vector.shape_cast %59 : vector<1x32x16xbf16> to vector<32x16xbf16>
    %cst_24 = arith.constant dense<0.000000e+00> : vector<16x16xf32>
    %61 = tpu.matmul %58, %60, %cst_24 {dimension_numbers = #tpu.dot_dimension_numbers<[1], [0], [0], [1], [0, 0, 1, 1], [], []>} : vector<16x32xbf16>, vector<32x16xbf16>, vector<16x16xf32> -> vector<16x16xf32>
    %62 = vector.extract_strided_slice %56 {offsets = [1, 0], sizes = [16, 32], strides = [1, 1]} : vector<18x32xf32> to vector<16x32xf32>
    %63 = arith.truncf %62 : vector<16x32xf32> to vector<16x32xbf16>
    %c1_25 = arith.constant 1 : index
    %c0_26 = arith.constant 0 : index
    %c0_27 = arith.constant 0 : index
    %64 = vector.load %arg4[%c1_25, %c0_26, %c0_27] : memref<3x32x16xbf16, #tpu.memory_space<vmem>>, vector<1x32x16xbf16>
    %65 = vector.shape_cast %64 : vector<1x32x16xbf16> to vector<32x16xbf16>
    %cst_28 = arith.constant dense<0.000000e+00> : vector<16x16xf32>
    %66 = tpu.matmul %63, %65, %cst_28 {dimension_numbers = #tpu.dot_dimension_numbers<[1], [0], [0], [1], [0, 0, 1, 1], [], []>} : vector<16x32xbf16>, vector<32x16xbf16>, vector<16x16xf32> -> vector<16x16xf32>
    %67 = arith.addf %61, %66 : vector<16x16xf32>
    %68 = vector.extract_strided_slice %56 {offsets = [2, 0], sizes = [16, 32], strides = [1, 1]} : vector<18x32xf32> to vector<16x32xf32>
    %69 = arith.truncf %68 : vector<16x32xf32> to vector<16x32xbf16>
    %c2_29 = arith.constant 2 : index
    %c0_30 = arith.constant 0 : index
    %c0_31 = arith.constant 0 : index
    %70 = vector.load %arg4[%c2_29, %c0_30, %c0_31] : memref<3x32x16xbf16, #tpu.memory_space<vmem>>, vector<1x32x16xbf16>
    %71 = vector.shape_cast %70 : vector<1x32x16xbf16> to vector<32x16xbf16>
    %cst_32 = arith.constant dense<0.000000e+00> : vector<16x16xf32>
    %72 = tpu.matmul %69, %71, %cst_32 {dimension_numbers = #tpu.dot_dimension_numbers<[1], [0], [0], [1], [0, 0, 1, 1], [], []>} : vector<16x32xbf16>, vector<32x16xbf16>, vector<16x16xf32> -> vector<16x16xf32>
    %73 = arith.addf %67, %72 : vector<16x16xf32>
    %cst_33 = arith.constant 0.000000e+00 : f32
    %74 = vector.broadcast %cst_33 : f32 to vector<16x16xf32>
    %75 = arith.maximumf %73, %74 : vector<16x16xf32>
    %76 = vector.broadcast %2 : vector<16x1xf32> to vector<16x16xf32>
    %77 = arith.mulf %75, %76 : vector<16x16xf32>
    %78 = vector.shape_cast %2 : vector<16x1xf32> to vector<1x16x1xf32>
    %cst_34 = arith.constant dense<0.000000e+00> : vector<1xf32>
    %79 = vector.multi_reduction <add>, %78, %cst_34 [1, 2] : vector<1x16x1xf32> to vector<1xf32>
    %80 = vector.shape_cast %79 : vector<1xf32> to vector<1x1x1xf32>
    %81 = vector.extract %80[0, 0, 0] : f32 from vector<1x1x1xf32>
    %cst_35 = arith.constant 1.000000e+00 : f32
    %82 = arith.maximumf %81, %cst_35 : f32
    %cst_36 = arith.constant dense<0.000000e+00> : vector<16xf32>
    %83 = vector.multi_reduction <add>, %77, %cst_36 [0] : vector<16x16xf32> to vector<16xf32>
    %84 = vector.shape_cast %83 : vector<16xf32> to vector<1x16xf32>
    %85 = vector.broadcast %82 : f32 to vector<1x16xf32>
    %86 = arith.divf %84, %85 : vector<1x16xf32>
    %87 = arith.mulf %77, %77 : vector<16x16xf32>
    %cst_37 = arith.constant dense<0.000000e+00> : vector<16xf32>
    %88 = vector.multi_reduction <add>, %87, %cst_37 [0] : vector<16x16xf32> to vector<16xf32>
    %89 = vector.shape_cast %88 : vector<16xf32> to vector<1x16xf32>
    %90 = vector.broadcast %82 : f32 to vector<1x16xf32>
    %91 = arith.divf %89, %90 : vector<1x16xf32>
    %92 = arith.mulf %86, %86 : vector<1x16xf32>
    %93 = arith.subf %91, %92 : vector<1x16xf32>
    %94 = vector.broadcast %86 : vector<1x16xf32> to vector<16x16xf32>
    %95 = arith.subf %75, %94 : vector<16x16xf32>
    %cst_38 = arith.constant 9.99999974E-6 : f32
    %96 = vector.broadcast %cst_38 : f32 to vector<1x16xf32>
    %97 = arith.addf %93, %96 : vector<1x16xf32>
    %98 = math.rsqrt %97 : vector<1x16xf32>
    %99 = vector.broadcast %98 : vector<1x16xf32> to vector<16x16xf32>
    %100 = arith.mulf %95, %99 : vector<16x16xf32>
    %101 = vector.broadcast %2 : vector<16x1xf32> to vector<16x16xf32>
    %102 = arith.mulf %100, %101 : vector<16x16xf32>
    %103 = vector.broadcast %2 : vector<16x1xf32> to vector<16x16xf32>
    %104 = arith.mulf %102, %103 : vector<16x16xf32>
    %105 = arith.truncf %104 : vector<16x16xf32> to vector<16x16xbf16>
    %c0_39 = arith.constant 0 : index
    %c0_40 = arith.constant 0 : index
    %c0_41 = arith.constant 0 : index
    %106 = vector.load %arg5[%c0_39, %c0_40, %c0_41] : memref<1x16x32xbf16, #tpu.memory_space<vmem>>, vector<1x16x32xbf16>
    %107 = vector.shape_cast %106 : vector<1x16x32xbf16> to vector<16x32xbf16>
    %cst_42 = arith.constant dense<0.000000e+00> : vector<16x32xf32>
    %108 = tpu.matmul %105, %107, %cst_42 {dimension_numbers = #tpu.dot_dimension_numbers<[1], [0], [0], [1], [0, 0, 1, 1], [], []>} : vector<16x16xbf16>, vector<16x32xbf16>, vector<16x32xf32> -> vector<16x32xf32>
    %c0_43 = arith.constant 0 : index
    %c0_44 = arith.constant 0 : index
    %c0_45 = arith.constant 0 : index
    %109 = vector.load %arg6[%c0_43, %c0_44, %c0_45] : memref<1x16x32xf32, #tpu.memory_space<vmem>>, vector<1x16x32xf32>
    %110 = vector.shape_cast %109 : vector<1x16x32xf32> to vector<16x32xf32>
    %111 = vector.shape_cast %108 : vector<16x32xf32> to vector<1x16x32xf32>
    tpu.vector_store %arg6[%c0_43, %c0_44, %c0_45], %111 {strides = array<i32>} : memref<1x16x32xf32, #tpu.memory_space<vmem>>, vector<1x16x32xf32>,
    return
  }
  func.func @transform_0(%arg0: i32) -> (i32, i32, i32) {
    %c0_i32 = arith.constant 0 : i32
    %c0_i32_0 = arith.constant 0 : i32
    %c0_i32_1 = arith.constant 0 : i32
    return %arg0, %c0_i32, %c0_i32_0 : i32, i32, i32
  }
  func.func @transform_1(%arg0: i32) -> (i32, i32, i32) {
    %c0_i32 = arith.constant 0 : i32
    %c0_i32_0 = arith.constant 0 : i32
    %c0_i32_1 = arith.constant 0 : i32
    return %arg0, %c0_i32, %c0_i32_0 : i32, i32, i32
  }
  func.func @transform_2(%arg0: i32) -> (i32, i32, i32) {
    %c0_i32 = arith.constant 0 : i32
    %c0_i32_0 = arith.constant 0 : i32
    %c0_i32_1 = arith.constant 0 : i32
    %c0_i32_2 = arith.constant 0 : i32
    return %c0_i32, %c0_i32_0, %c0_i32_1 : i32, i32, i32
  }
  func.func @transform_3(%arg0: i32) -> (i32, i32, i32) {
    %c0_i32 = arith.constant 0 : i32
    %c0_i32_0 = arith.constant 0 : i32
    %c0_i32_1 = arith.constant 0 : i32
    %c0_i32_2 = arith.constant 0 : i32
    return %c0_i32, %c0_i32_0, %c0_i32_1 : i32, i32, i32
  }
  func.func @transform_4(%arg0: i32) -> (i32, i32, i32) {
    %c0_i32 = arith.constant 0 : i32
    %c0_i32_0 = arith.constant 0 : i32
    %c0_i32_1 = arith.constant 0 : i32
    %c0_i32_2 = arith.constant 0 : i32
    return %c0_i32, %c0_i32_0, %c0_i32_1 : i32, i32, i32
  }
  func.func @transform_5(%arg0: i32) -> (i32, i32, i32) {
    %c0_i32 = arith.constant 0 : i32
    %c0_i32_0 = arith.constant 0 : i32
    %c0_i32_1 = arith.constant 0 : i32
    return %arg0, %c0_i32, %c0_i32_0 : i32, i32, i32
  }
}

module attributes {stable_mosaic.version = 11 : i64} {
  func.func @_attention_kernel(%arg0: i32, %arg1: i32, %arg2: memref<2xi32, #tpu.memory_space<smem>>, %arg3: memref<2xi32, #tpu.memory_space<smem>>, %arg4: memref<1x16x32xf32, #tpu.memory_space<vmem>>, %arg5: memref<1x128x32xf32, #tpu.memory_space<vmem>>, %arg6: memref<1x16x12xf32, #tpu.memory_space<vmem>>, %arg7: memref<1x16x12xf32, #tpu.memory_space<vmem>>) attributes {dimension_semantics = [#tpu.dimension_semantics<parallel>, #tpu.dimension_semantics<parallel>], iteration_bounds = array<i64: 2, 1>, scalar_prefetch = 2 : i64, scratch_operands = 0 : i64, tpu.core_type = #tpu.core_type<tc>, window_params = [{transform_indices = @transform_0, window_bounds = array<i64: 1, 16, 32>}, {transform_indices = @transform_1, window_bounds = array<i64: 1, 128, 32>}, {transform_indices = @transform_2, window_bounds = array<i64: 1, 16, 12>}, {transform_indices = @transform_3, window_bounds = array<i64: 1, 16, 12>}]} {
    %0 = arith.index_cast %arg0 : i32 to index
    %1 = memref.load %arg2[%0] : memref<2xi32, #tpu.memory_space<smem>>
    %2 = arith.index_cast %arg0 : i32 to index
    %3 = memref.load %arg3[%2] : memref<2xi32, #tpu.memory_space<smem>>
    %c1_i32 = arith.constant 1 : i32
    %4 = arith.maxsi %1, %c1_i32 : i32
    %5 = arith.sitofp %4 : i32 to f32
    %cst = arith.constant 1.000000e+00 : f32
    %6 = arith.divf %cst, %5 : f32
    %c1_i32_0 = arith.constant 1 : i32
    %7 = arith.maxsi %3, %c1_i32_0 : i32
    %8 = arith.sitofp %7 : i32 to f32
    %cst_1 = arith.constant 1.000000e+00 : f32
    %9 = arith.divf %cst_1, %8 : f32
    %c0 = arith.constant 0 : index
    %c0_2 = arith.constant 0 : index
    %c0_3 = arith.constant 0 : index
    %10 = vector.load %arg4[%c0, %c0_2, %c0_3] : memref<1x16x32xf32, #tpu.memory_space<vmem>>, vector<1x16x32xf32>
    %11 = vector.shape_cast %10 : vector<1x16x32xf32> to vector<16x32xf32>
    %12 = arith.truncf %11 : vector<16x32xf32> to vector<16x32xbf16>
    %c0_4 = arith.constant 0 : index
    %c0_5 = arith.constant 0 : index
    %c0_6 = arith.constant 0 : index
    %13 = vector.load %arg5[%c0_4, %c0_5, %c0_6] : memref<1x128x32xf32, #tpu.memory_space<vmem>>, vector<1x128x32xf32>
    %14 = vector.shape_cast %13 : vector<1x128x32xf32> to vector<128x32xf32>
    %15 = arith.truncf %14 : vector<128x32xf32> to vector<128x32xbf16>
    %cst_7 = arith.constant dense<0.000000e+00> : vector<16x128xf32>
    %16 = tpu.matmul %12, %15, %cst_7 {dimension_numbers = #tpu.dot_dimension_numbers<[1], [1], [0], [0], [0, 0, 1, 0], [], []>} : vector<16x32xbf16>, vector<128x32xbf16>, vector<16x128xf32> -> vector<16x128xf32>
    %c16_i32 = arith.constant 16 : i32
    %17 = arith.muli %arg1, %c16_i32 : i32
    %18 = tpu.iota {dimensions = array<i32: 0>} : vector<16x1xi32>
    %19 = vector.broadcast %17 : i32 to vector<16x1xi32>
    %20 = arith.addi %19, %18 : vector<16x1xi32>
    %21 = tpu.iota {dimensions = array<i32: 1>} : vector<1x128xi32>
    %22 = vector.broadcast %3 : i32 to vector<16x1xi32>
    %23 = arith.cmpi slt, %20, %22 : vector<16x1xi32>
    %24 = arith.extui %23 : vector<16x1xi1> to vector<16x1xi32>
    %25 = arith.sitofp %24 : vector<16x1xi32> to vector<16x1xf32>
    %26 = vector.broadcast %1 : i32 to vector<1x128xi32>
    %27 = arith.cmpi slt, %21, %26 : vector<1x128xi32>
    %28 = arith.extui %27 : vector<1x128xi1> to vector<1x128xi32>
    %29 = arith.sitofp %28 : vector<1x128xi32> to vector<1x128xf32>
    %c12_i32 = arith.constant 12 : i32
    %30 = vector.broadcast %c12_i32 : i32 to vector<1x128xi32>
    %31 = arith.cmpi slt, %21, %30 : vector<1x128xi32>
    %cst_8 = arith.constant 0.000000e+00 : f32
    %cst_9 = arith.constant 0xFF800000 : f32
    %32 = vector.broadcast %cst_8 : f32 to vector<1x128xf32>
    %33 = vector.broadcast %cst_9 : f32 to vector<1x128xf32>
    %34 = arith.select %31, %32, %33 : vector<1x128xi1>, vector<1x128xf32>
    %35 = arith.sitofp %20 : vector<16x1xi32> to vector<16x1xf32>
    %36 = vector.broadcast %9 : f32 to vector<16x1xf32>
    %37 = arith.mulf %35, %36 : vector<16x1xf32>
    %38 = arith.sitofp %21 : vector<1x128xi32> to vector<1x128xf32>
    %39 = vector.broadcast %6 : f32 to vector<1x128xf32>
    %40 = arith.mulf %38, %39 : vector<1x128xf32>
    %41 = vector.broadcast %40 : vector<1x128xf32> to vector<16x128xf32>
    %42 = vector.broadcast %37 : vector<16x1xf32> to vector<16x128xf32>
    %43 = arith.subf %41, %42 : vector<16x128xf32>
    %44 = arith.mulf %43, %43 : vector<16x128xf32>
    %cst_10 = arith.constant -5.000000e+01 : f32
    %45 = vector.broadcast %cst_10 : f32 to vector<16x128xf32>
    %46 = arith.mulf %44, %45 : vector<16x128xf32>
    %47 = math.exp %46 : vector<16x128xf32>
    %48 = vector.broadcast %29 : vector<1x128xf32> to vector<16x128xf32>
    %49 = vector.broadcast %25 : vector<16x1xf32> to vector<16x128xf32>
    %50 = arith.mulf %48, %49 : vector<16x128xf32>
    %51 = arith.mulf %47, %50 : vector<16x128xf32>
    %cst_11 = arith.constant dense<0.000000e+00> : vector<16xf32>
    %52 = vector.multi_reduction <add>, %51, %cst_11 [1] : vector<16x128xf32> to vector<16xf32>
    %53 = vector.shape_cast %52 : vector<16xf32> to vector<16x1xf32>
    %cst_12 = arith.constant 9.99999974E-6 : f32
    %54 = vector.broadcast %cst_12 : f32 to vector<16x1xf32>
    %55 = arith.addf %53, %54 : vector<16x1xf32>
    %56 = tpu.reciprocal %55 {approx = true} : vector<16x1xf32> -> vector<16x1xf32>
    %57 = vector.broadcast %56 : vector<16x1xf32> to vector<16x128xf32>
    %58 = arith.mulf %51, %57 : vector<16x128xf32>
    %cst_13 = arith.constant 9.99999974E-5 : f32
    %59 = vector.broadcast %cst_13 : f32 to vector<16x128xf32>
    %60 = arith.cmpf oge, %58, %59 : vector<16x128xf32>
    %cst_14 = arith.constant 0.000000e+00 : f32
    %61 = vector.broadcast %cst_14 : f32 to vector<16x128xf32>
    %62 = arith.select %60, %58, %61 : vector<16x128xi1>, vector<16x128xf32>
    %63 = math.log %55 : vector<16x1xf32>
    %64 = vector.broadcast %63 : vector<16x1xf32> to vector<16x128xf32>
    %65 = arith.subf %46, %64 : vector<16x128xf32>
    %cst_15 = arith.constant -13.8155107 : f32
    %66 = vector.broadcast %cst_15 : f32 to vector<16x128xf32>
    %67 = arith.select %60, %65, %66 : vector<16x128xi1>, vector<16x128xf32>
    %68 = vector.broadcast %34 : vector<1x128xf32> to vector<16x128xf32>
    %69 = arith.addf %16, %68 : vector<16x128xf32>
    %cst_16 = arith.constant dense<0xFF800000> : vector<16xf32>
    %70 = vector.multi_reduction <maximumf>, %69, %cst_16 [1] : vector<16x128xf32> to vector<16xf32>
    %71 = vector.shape_cast %70 : vector<16xf32> to vector<16x1xf32>
    %72 = vector.broadcast %71 : vector<16x1xf32> to vector<16x128xf32>
    %73 = arith.subf %69, %72 : vector<16x128xf32>
    %74 = math.exp %73 : vector<16x128xf32>
    %cst_17 = arith.constant dense<0.000000e+00> : vector<16xf32>
    %75 = vector.multi_reduction <add>, %74, %cst_17 [1] : vector<16x128xf32> to vector<16xf32>
    %76 = vector.shape_cast %75 : vector<16xf32> to vector<16x1xf32>
    %77 = math.log %76 : vector<16x1xf32>
    %78 = arith.addf %77, %71 : vector<16x1xf32>
    %79 = vector.broadcast %78 : vector<16x1xf32> to vector<16x128xf32>
    %80 = arith.subf %16, %79 : vector<16x128xf32>
    %81 = arith.addf %80, %67 : vector<16x128xf32>
    %82 = vector.extract_strided_slice %81 {offsets = [0, 0], sizes = [16, 12], strides = [1, 1]} : vector<16x128xf32> to vector<16x12xf32>
    %c0_18 = arith.constant 0 : index
    %c0_19 = arith.constant 0 : index
    %c0_20 = arith.constant 0 : index
    %83 = vector.load %arg7[%c0_18, %c0_19, %c0_20] : memref<1x16x12xf32, #tpu.memory_space<vmem>>, vector<1x16x12xf32>
    %84 = vector.shape_cast %83 : vector<1x16x12xf32> to vector<16x12xf32>
    %85 = vector.shape_cast %82 : vector<16x12xf32> to vector<1x16x12xf32>
    tpu.vector_store %arg7[%c0_18, %c0_19, %c0_20], %85 {strides = array<i32>} : memref<1x16x12xf32, #tpu.memory_space<vmem>>, vector<1x16x12xf32>,
    %cst_21 = arith.constant 9.99999997E-7 : f32
    %86 = vector.broadcast %cst_21 : f32 to vector<16x128xf32>
    %87 = arith.addf %62, %86 : vector<16x128xf32>
    %88 = arith.mulf %74, %87 : vector<16x128xf32>
    %89 = vector.broadcast %29 : vector<1x128xf32> to vector<16x128xf32>
    %90 = arith.mulf %88, %89 : vector<16x128xf32>
    %cst_22 = arith.constant dense<0.000000e+00> : vector<16xf32>
    %91 = vector.multi_reduction <add>, %90, %cst_22 [1] : vector<16x128xf32> to vector<16xf32>
    %92 = vector.shape_cast %91 : vector<16xf32> to vector<16x1xf32>
    %cst_23 = arith.constant 1.000000e-30 : f32
    %93 = vector.broadcast %cst_23 : f32 to vector<16x1xf32>
    %94 = arith.maximumf %92, %93 : vector<16x1xf32>
    %cst_24 = arith.constant 1.000000e+00 : f32
    %95 = vector.broadcast %cst_24 : f32 to vector<16x1xf32>
    %96 = arith.divf %95, %94 : vector<16x1xf32>
    %97 = vector.broadcast %96 : vector<16x1xf32> to vector<16x128xf32>
    %98 = arith.mulf %90, %97 : vector<16x128xf32>
    %99 = vector.broadcast %25 : vector<16x1xf32> to vector<16x128xf32>
    %100 = arith.mulf %98, %99 : vector<16x128xf32>
    %101 = vector.extract_strided_slice %100 {offsets = [0, 0], sizes = [16, 12], strides = [1, 1]} : vector<16x128xf32> to vector<16x12xf32>
    %c0_25 = arith.constant 0 : index
    %c0_26 = arith.constant 0 : index
    %c0_27 = arith.constant 0 : index
    %102 = vector.load %arg6[%c0_25, %c0_26, %c0_27] : memref<1x16x12xf32, #tpu.memory_space<vmem>>, vector<1x16x12xf32>
    %103 = vector.shape_cast %102 : vector<1x16x12xf32> to vector<16x12xf32>
    %104 = vector.shape_cast %101 : vector<16x12xf32> to vector<1x16x12xf32>
    tpu.vector_store %arg6[%c0_25, %c0_26, %c0_27], %104 {strides = array<i32>} : memref<1x16x12xf32, #tpu.memory_space<vmem>>, vector<1x16x12xf32>,
    return
  }
  func.func @transform_0(%arg0: i32, %arg1: i32, %arg2: memref<2xi32, #tpu.memory_space<smem>>, %arg3: memref<2xi32, #tpu.memory_space<smem>>) -> (i32, i32, i32) {
    %c0_i32 = arith.constant 0 : i32
    %c0_i32_0 = arith.constant 0 : i32
    return %arg0, %arg1, %c0_i32 : i32, i32, i32
  }
  func.func @transform_1(%arg0: i32, %arg1: i32, %arg2: memref<2xi32, #tpu.memory_space<smem>>, %arg3: memref<2xi32, #tpu.memory_space<smem>>) -> (i32, i32, i32) {
    %c0_i32 = arith.constant 0 : i32
    %c0_i32_0 = arith.constant 0 : i32
    %c0_i32_1 = arith.constant 0 : i32
    return %arg0, %c0_i32, %c0_i32_0 : i32, i32, i32
  }
  func.func @transform_2(%arg0: i32, %arg1: i32, %arg2: memref<2xi32, #tpu.memory_space<smem>>, %arg3: memref<2xi32, #tpu.memory_space<smem>>) -> (i32, i32, i32) {
    %c0_i32 = arith.constant 0 : i32
    %c0_i32_0 = arith.constant 0 : i32
    return %arg0, %arg1, %c0_i32 : i32, i32, i32
  }
  func.func @transform_3(%arg0: i32, %arg1: i32, %arg2: memref<2xi32, #tpu.memory_space<smem>>, %arg3: memref<2xi32, #tpu.memory_space<smem>>) -> (i32, i32, i32) {
    %c0_i32 = arith.constant 0 : i32
    %c0_i32_0 = arith.constant 0 : i32
    return %arg0, %arg1, %c0_i32 : i32, i32, i32
  }
}

</mosaic_0001>

<bundles_post_ra>
// kernel: conv_attention_forward.5
= control target key start
LH: loop header
LB: loop body
LE: loop exit
PB: predicated region body
PF: predicated region fallthrough
CT: control target
= control target key end

     0   :  { %s1488_s0 = inlined_call_operand.hbm [shape: s32[2], index: 0, kind: input, shape index: {}]   ;;  %s1489_s2 = inlined_call_operand.hbm [shape: f32[2,16,32], index: 2, kind: input, shape index: {}]   ;;  %s1490_s3 = inlined_call_operand.hbm [shape: f32[2,128,32], index: 3, kind: input, shape index: {}]   ;;  %s1491_s4 = inlined_call_operand.hbm [shape: f32[2,16,12], index: 4, kind: output, shape index: {0}]   ;;  %s1492_s5 = inlined_call_operand.hbm [shape: f32[2,16,12], index: 5, kind: output, shape index: {1}]   ;;  %s1493_s1 = inlined_call_operand.hbm [shape: s32[2], index: 1, kind: input, shape index: {}]  }
   0x1   :  { %s856_s20 = scalar_lea.hbm %s1488_s0, 16 }
   0x2   :  { %p857_p0 = scmp.ne.s32.totalorder %s1488_s0, %s856_s20  ;;  %p860_p1 = scmp.lt.u32.totalorder %s856_s20, %s1488_s0 }
   0x4   :  { %p862_p2 = pnand %p860_p1, %p857_p0 }
   0x6   :  { %865 = shalt.err (!%p862_p2)  }
   0x7   :  { %s1058_s25 = smov [#allocation3]   ;;  %s866_s30 = scalar_lea.hbm %s1493_s1, 16 }
   0x8   :  { %12 = dma.hbm_to_smem %s1488_s0, 16, %s1058_s25, [#allocation2] }
   0x9   :  { %p867_p3 = scmp.ne.s32.totalorder %s1493_s1, %s866_s30  ;;  %p870_p4 = scmp.lt.u32.totalorder %s866_s30, %s1493_s1 }
   0xb   :  { %p872_p5 = pnand %p870_p4, %p867_p3 }
   0xd   :  { %875 = shalt.err (!%p872_p5)  }
   0xe   :  { %s1059_s10 = smov [#allocation4]  }
   0xf   :  { %14 = dma.hbm_to_smem %s1493_s1, 16, %s1059_s10, [#allocation2] }
  0x10   :  { %1016 = dma.done.wait [#allocation2], 32 }
  0x11   :  { %1017 = vsyncadd [#allocation2], 4294967264 }
  0x12   :  { %16 = sfence }
  0x13   :  { %17 = vsyncpa [#allocation6], 0 }
  0x14   :  { %19 = vsyncpa [#allocation6 + $0x1], 0 }
  0x15   :  { %20 = vsyncpa [#allocation9], 0 }
  0x16   :  { %22 = vsyncpa [#allocation9 + $0x1], 0 }
  0x17   :  { %23 = vsyncpa [#allocation7], 0 }
  0x18   :  { %25 = vsyncpa [#allocation7 + $0x1], 0 }
  0x19   :  { %26 = vsyncpa [#allocation12], 0 }
  0x1a   :  { %28 = vsyncpa [#allocation12 + $0x1], 0  ;;  %s1125_s0 = smov 0   ;;  %s1127_s13 = smov 0  }
  0x1b   :  { %s1129_s14 = smov 0   ;;  %s1131_s15 = smov 0  }
  0x1c   :  { %s1133_s1 = smov 0   ;;  %s1135_s16 = smov 0  }
  0x1d LB: > { %s683_s17 = sadd.s32 4294967295, %s1056_s16   ;;  %s684_s18 = sadd.s32 4294967294, %s1056_s16   ;;  %s1056_s16 = sphi %s1135_s16, %s34_s16   ;;  %s1052_s1 = sphi %s1133_s1, %s1511_s1   ;;  %s1048_s15 = sphi %s1131_s15, %s1510_s15   ;;  %s1044_s14 = sphi %s1129_s14, %s1509_s14   ;;  %s1040_s13 = sphi %s1127_s13, %s1508_s13   ;;  %s1036_s0 = sphi %s1125_s0, %s1507_s0  }
  0x1e   : > { %s46_s19 = sadd.s32 1, %s1052_s1  ;;  %s55_s20 = sadd.s32 1, %s1044_s14 }
  0x1f   : > { %p48_p6 = scmp.ge.s32.totalorder %s46_s19, 2  ;;  %p62_p7 = scmp.ne.s32.totalorder %s1044_s14, %s1040_s13 }
  0x20   : > { %p63_p8 = scmp.eq.s32.totalorder %s1056_s16, 0  ;;  %p68_p9 = scmp.ne.s32.totalorder %s1040_s13, %s1036_s0 }
  0x21   : > { %s1513_s19 = smov (%p48_p6, %s46_s19), 0  ;;  %p69_p11 = scmp.eq.s32.totalorder %s683_s17, 0 }
  0x22   : > { %p1166_p10 = por %p63_p8, %p62_p7  ;;  %s50_s22 = ssub.s32 %s1052_s1, %s1513_s19 }
  0x23   : > { %p120_p12 = scmp.eq.s32.totalorder %s683_s17, 1  ;;  %p53_p13 = scmp.eq.s32.totalorder %s50_s22, 0 }
  0x24   : > { %p1172_p0 = por %p69_p11, %p68_p9  ;;  %p126_p2 = scmp.eq.s32.totalorder %s684_s18, 1 }
  0x25   : > { %p1176_p1 = por %p120_p12, %p62_p7  ;;  %p769_p5 = scmp.lt.s32.totalorder %s1056_s16, 2 }
  0x26   : > { %s1497_s23 = scalar_select %p1172_p0, 1, 0 }
  0x27   : > { %s1498_s24 = scalar_select %p1176_p1, 1, 0 }
  0x28   : > { %s1181_s25 = scalar_select %p53_p13, %s1044_s14, %s55_s20  }
  0x29   : > { %p1183_p3 = por %p126_p2, %p68_p9  ;;  %s1190_s27 = sand.u32 1, %s1044_s14  }
  0x2a   : > { %s687_s28 = sshll.u32 %s1190_s27, 4  ;;  %s710_s29 = sshll.u32 %s1052_s1, 8 }
  0x2b   : > { %s1499_s26 = scalar_select %p1183_p3, 1, 0 }
  0x2c   : > { %s1197_s7 = scalar_lea.hbm %s1489_s2, %s710_s29  ;;  %s178_s8 = scalar_lea.vmem [#allocation5], %s687_s28 }
  0x2d   : > { %s187_s9 = sshll.u32 %s178_s8, 4  ;;  %p1203_p6 = pnand %p769_p5, %p1166_p10  ;;  %s1199_s9 = int_to_ptr.vmem [resolvable:$true] %s187_s9 }
  0x2e   : > { %s175_s11 = scalar_lea.sflag [#allocation6], %s1190_s27  ;;  %s876_s12 = scalar_lea.hbm %s1197_s7, 256 }
  0x2f   : > { %p877_p8 = scmp.ne.s32.totalorder %s1197_s7, %s876_s12  ;;  %p878_p9 = pneg %p1203_p6 }
  0x30   : > { %s881_s20 = scalar_lea.hbm %s1489_s2, 512  ;;  %p882_p10 = scmp.lt.u32.totalorder %s1197_s7, %s1489_s2 }
  0x31   : > { %p879_p11 = pnand %p878_p9, %p877_p8  ;;  %p883_p13 = scmp.lt.u32.totalorder %s881_s20, %s876_s12 }
  0x32   : > { %p885_p5 = scmp.lt.u32.totalorder %s876_s12, %s1197_s7 }
  0x33   : > { %p880_p12 = pneg %p879_p11  ;;  %p884_p2 = por %p883_p13, %p882_p10 }
  0x35   : > { %p886_p4 = por %p885_p5, %p884_p2 }
  0x37   : > { %p887_p7 = pnand %p886_p4, %p880_p12 }
  0x39   : > { %890 = shalt.err (!%p887_p7)
}
  0x3a   : > { %s891_s28 = scalar_lea.vmem %s1199_s9, 256  ;;  %s1060_s29 = smov [#allocation5]  }
  0x3b   : > { %p892_p8 = scmp.ne.s32.totalorder %s1199_s9, %s891_s28  ;;  %s896_s30 = sshll.u32 %s1060_s29, 4  ;;  %s897_s30 = int_to_ptr.vmem [resolvable:$false] %s896_s30 }
  0x3c   : > { %s898_s6 = scalar_lea.vmem %s897_s30, 512  ;;  %p899_p1 = scmp.lt.s32.totalorder %s1199_s9, %s897_s30 }
  0x3d   : > { %p894_p11 = pnand %p892_p8, %p878_p9  ;;  %p900_p10 = scmp.lt.s32.totalorder %s898_s6, %s891_s28 }
  0x3f   : > { %p895_p3 = pneg %p894_p11  ;;  %p901_p13 = por %p900_p10, %p899_p1 }
  0x41   : > { %p902_p2 = pnand %p901_p13, %p895_p3 }
  0x43   : > { %905 = shalt.err (!%p902_p2)
}
  0x44   : > { %s1061_s8 = smov 128   ;;  %s1062_s12 = smov 8  }
  0x45   : > { %758 = dma.hbm_to_vmem [thread:$0]  (!%p1203_p6), %s1197_s7, 256, %s1199_s9, %s175_s11, %s1061_s8, %s1061_s8, %s1062_s12  }
  0x46   : > { %p216_p1 = scmp.lt.s32.totalorder %s1056_s16, 3  ;;  %s690_s17 = sshll.u32 %s1190_s27, 7 }
  0x47   : > { %s711_s18 = sshll.u32 %s1052_s1, 11  ;;  %p1501_p3 = scmp.ge.s32.totalorder %s1056_s16, 1 }
  0x48   : > { %s1251_s28 = scalar_lea.hbm %s1490_s3, %s711_s18  ;;  %s201_s29 = scalar_lea.vmem [#allocation8], %s690_s17 }
  0x49   : > { %p1244_p4 = pnand %p1501_p3, %p216_p1  ;;  %s208_s30 = sshll.u32 %s201_s29, 4  ;;  %s1253_s30 = int_to_ptr.vmem [resolvable:$true] %s208_s30 }
  0x4a   : > { %s198_s7 = scalar_lea.sflag [#allocation9], %s1190_s27  ;;  %s906_s9 = scalar_lea.hbm %s1251_s28, 2048 }
  0x4b   : > { %p907_p7 = scmp.ne.s32.totalorder %s1251_s28, %s906_s9  ;;  %s911_s18 = scalar_lea.hbm %s1490_s3, 4096 }
  0x4c   : > { %p912_p8 = scmp.lt.u32.totalorder %s1251_s28, %s1490_s3  ;;  %p913_p11 = scmp.lt.u32.totalorder %s911_s18, %s906_s9 }
  0x4d   : > { %p909_p12 = pnand %p907_p7, %p878_p9  ;;  %p915_p13 = scmp.lt.u32.totalorder %s906_s9, %s1251_s28 }
  0x4e   : > { %p914_p10 = por %p913_p11, %p912_p8 }
  0x4f   : > { %p910_p5 = pneg %p909_p12 }
  0x50   : > { %p916_p2 = por %p915_p13, %p914_p10 }
  0x52   : > { %p917_p1 = pnand %p916_p2, %p910_p5 }
  0x54   : > { %920 = shalt.err (!%p917_p1)
}
  0x55   : > { %s921_s17 = scalar_lea.vmem %s1253_s30, 2048  ;;  %s1063_s29 = smov [#allocation8]  }
  0x56   : > { %p922_p3 = scmp.ne.s32.totalorder %s1253_s30, %s921_s17  ;;  %s926_s11 = sshll.u32 %s1063_s29, 4  ;;  %s927_s11 = int_to_ptr.vmem [resolvable:$false] %s926_s11 }
  0x57   : > { %s928_s6 = scalar_lea.vmem %s927_s11, 4096  ;;  %p929_p0 = scmp.lt.s32.totalorder %s1253_s30, %s927_s11 }
  0x58   : > { %p924_p7 = pnand %p922_p3, %p878_p9  ;;  %p930_p8 = scmp.lt.s32.totalorder %s928_s6, %s921_s17 }
  0x5a   : > { %p925_p12 = pneg %p924_p7  ;;  %p931_p11 = por %p930_p8, %p929_p0 }
  0x5c   : > { %p932_p10 = pnand %p931_p11, %p925_p12 }
  0x5e   : > { %935 = shalt.err (!%p932_p10)
}
  0x5f   : > { %761 = dma.hbm_to_vmem [thread:$0]  (!%p1203_p6), %s1251_s28, 2048, %s1253_s30, %s198_s7, %s1061_s8, %s1061_s8, %s1062_s12  }
  0x60   : > { %220 = sbr.rel (%p1244_p4) target bundleno = 749 (0x2ed), region = 28  ;;  %s1287_s9 = sand.u32 (!%p1244_p4), 1, %s1040_s13  }
  0x61   : > { %s1290_s18 = sshll.u32 (!%p1244_p4), %s1287_s9, 4  ;;  %s223_s10 = scalar_lea.sflag (!%p1244_p4), [#allocation6], %s1287_s9 }
  0x62   : > { %s226_s21 = scalar_lea.vmem (!%p1244_p4), [#allocation5], %s1290_s18  ;;  %p1503_p0 = scmp.ne.s32.totalorder (!%p1244_p4), %s1497_s23, 0 }
  0x67   : > { %1019 = dma.done.wait (%p1503_p0), %s223_s10, 256  }
  0x68   : > { %1021 = vsyncadd (%p1503_p0), %s223_s10, 4294967040  ;;  %s695_s27 = sshll.u32 %s1287_s9, 7  ;;  %s232_s8 = scalar_lea.sflag [#allocation9], %s1287_s9 }
  0x69   : > { %s1300_s12 = scalar_lea.vmem [#allocation8], %s695_s27 }
  0x6a   : > { %1023 = dma.done.wait (%p1503_p0), %s232_s8, 2048  }
  0x6b   : > { %1025 = vsyncadd (%p1503_p0), %s232_s8, 4294965248  ;;  %v1064_v0 = vmov 0.0   ;;  %s272_s20 = sld [smem:[#allocation3 + %s1048_s15]]  ;;  %vm1065_vm0 = vmmov 0   ;;  %v383_v1 = vlaneseq  ;;  %vm313_vm1 = vcmask 261120   ;;  %v289_v3 = vld [vmem:[%s1300_s12] sm:$0xff] }
  0x6c   : > { %723 = vmatprep.subr.bf16.mxu0 %v1064_v0  ;;  %s273_s28 = sld [smem:[#allocation4 + %s1048_s15]]  ;;  %739 = vmatprep.mubr.msk.bf16.mxu0 %vm1065_vm0, %v1064_v0  ;;  %v290_v4 = vld [vmem:[%s1300_s12 + $0x8] sm:$0xff]  ;;  %v291_v10 = vld [vmem:[%s1300_s12 + $0x10] sm:$0xff]  ;;  %v292_v11 = vld [vmem:[%s1300_s12 + $0x18] sm:$0xff]  ;;  %vm474_vm8 = vcmask 97280   ;;  %s712_s17 = sshll.u32 %s1048_s15, 8 }
  0x6d   : > { %v1310_v2 = vshrl.u32 %v383_v1, 7  ;;  %v1314_v5 = vand.u32 127, %v383_v1  ;;  %v305_v8 = vpack.c.bf16 %v290_v4, %v289_v3  ;;  %v306_v15 = vpack.c.bf16 %v292_v11, %v291_v10  ;;  %v293_v20 = vld [vmem:[%s1300_s12 + $0x20] sm:$0xff]  ;;  %v294_v21 = vld [vmem:[%s1300_s12 + $0x28] sm:$0xff]  ;;  %v295_v26 = vld [vmem:[%s1300_s12 + $0x30] sm:$0xff]  ;;  %s267_s29 = scalar_lea.vmem [#allocation11], %s1290_s18  ;;  %s1396_s27 = scalar_lea.hbm %s1492_s5, %s712_s17 }
  0x6e   : > { %v307_v22 = vpack.c.bf16 %v294_v21, %v293_v20  ;;  %v296_v27 = vld [vmem:[%s1300_s12 + $0x38] sm:$0xff]  ;;  %v297_v30 = vld [vmem:[%s1300_s12 + $0x40] sm:$0xff]  ;;  %v298_v31 = vld [vmem:[%s1300_s12 + $0x48] sm:$0xff]  ;;  %s538_s11 = sshll.u32 %s267_s29, 4  ;;  %s1386_s6 = scalar_lea.vmem [#allocation10], %s1290_s18  ;;  %s1398_s11 = int_to_ptr.vmem [resolvable:$true] %s538_s11 }
  0x6f   : > { %v1317_v6 = vadd.s32 8, %v1310_v2  ;;  %v318_v13 = vsel %vm313_vm1, %v305_v8, 0  ;;  %v321_v19 = vsel %vm313_vm1, %v306_v15, 0  ;;  %v308_v28 = vpack.c.bf16 %v296_v27, %v295_v26  ;;  %v299_v34 = vld [vmem:[%s1300_s12 + $0x50] sm:$0xff]  ;;  %v300_v35 = vld [vmem:[%s1300_s12 + $0x58] sm:$0xff]  ;;  %v301_v38 = vld [vmem:[%s1300_s12 + $0x60] sm:$0xff] }
  0x70   : > { %724 = vmatpush3.bf16.xpose.msra.mxu0 %v318_v13  ;;  %v324_v24 = vsel %vm313_vm1, %v307_v22, 0  ;;  %v309_v32 = vpack.c.bf16 %v298_v31, %v297_v30  ;;  %v310_v36 = vpack.c.bf16 %v300_v35, %v299_v34  ;;  %v302_v39 = vld [vmem:[%s1300_s12 + $0x68] sm:$0xff]  ;;  %v303_v42 = vld [vmem:[%s1300_s12 + $0x70] sm:$0xff]  ;;  %v304_v43 = vld [vmem:[%s1300_s12 + $0x78] sm:$0xff]  ;;  %v409_v49 = vcvt.s32.f32 %v1314_v5  ;;  %s520_s10 = sshll.u32 %s1386_s6, 4  ;;  %s1404_s12 = scalar_lea.hbm %s1491_s4, %s712_s17  ;;  %s1406_s10 = int_to_ptr.vmem [resolvable:$true] %s520_s10 }
  0x71   : > { %p274_p6 = scmp.gt.s32.totalorder %s272_s20, 1  ;;  %v398_v9 = vstv %s272_s20  ;;  %725 = vmatprep.subr.bf16.mxu0 %v1064_v0  ;;  %v327_v29 = vsel %vm313_vm1, %v308_v28, 0  ;;  %v311_v40 = vpack.c.bf16 %v302_v39, %v301_v38  ;;  %v312_v44 = vpack.c.bf16 %v304_v43, %v303_v42  ;;  %v286_v46 = vld [vmem:[%s226_s21] sm:$0xff]  ;;  %v287_v47 = vld [vmem:[%s226_s21 + $0x8] sm:$0xff]  ;;  %p1504_p5 = scmp.ne.s32.totalorder %s1498_s24, 0 }
  0x72   : > { %p280_p9 = scmp.gt.s32.totalorder %s273_s28, 1  ;;  %v391_v7 = vstv %s273_s28  ;;  %vm399_vm3 = vcmp.lt.s32.totalorder %v1314_v5, %v398_v9  ;;  %v330_v33 = vsel %vm313_vm1, %v309_v32, 0  ;;  %v333_v37 = vsel %vm313_vm1, %v310_v36, 0 }
  0x73   : > { %vm392_vm2 = vcmp.lt.s32.totalorder %v1310_v2, %v391_v7  ;;  %s1515_s20 = smov (!%p274_p6, %s272_s20), 1  ;;  %vm393_vm4 = vcmp.lt.s32.totalorder %v1317_v6, %v391_v7  ;;  %v1330_v14 = vsel %vm399_vm3, 1.0, %v1064_v0  ;;  %v336_v41 = vsel %vm313_vm1, %v311_v40, 0 }
  0x74   : > { %v1323_v12 = vsel %vm392_vm2, 1.0, %v1064_v0  ;;  %s1517_s28 = smov (!%p280_p9, %s273_s28), 1  ;;  %s276_s23 = scvt.s32.f32 %s1515_s20  ;;  %v1334_v16 = vsel %vm393_vm4, 1.0, %v1064_v0  ;;  %v339_v45 = vsel %vm313_vm1, %v312_v44, 0  ;;  %v288_v48 = vpack.c.bf16 %v287_v47, %v286_v46 }
  0x75   : > { %s282_s30 = scvt.s32.f32 %s1517_s28  ;;  %v404_v50 = vcvt.s32.f32 %v1310_v2  ;;  %v405_v51 = vcvt.s32.f32 %v1317_v6  ;;  %v422_v1 = vmul.f32 %v1330_v14, %v1323_v12  ;;  %v423_v2 = vmul.f32 %v1330_v14, %v1334_v16  ;;  %s505_s20 = scalar_lea.sflag [#allocation12], %s1287_s9 }
  0x76   : > { %v277_v17 = vstv %s276_s23  ;;  %vm402_vm7 = vcmp.lt.s32.totalorder %v1314_v5, 12  ;;  %v1066_v27 = vmov -inf   ;;  %s936_s28 = scalar_lea.vmem %s1398_s11, 256  ;;  %s1067_s23 = smov [#allocation11]  }
  0x77   : > { %828 = vrcp.f32 %v277_v17  ;;  %v283_v18 = vstv %s282_s30  ;;  %v403_v28 = vsel %vm402_vm7, 0.0, %v1066_v27  ;;  %p937_p4 = scmp.ne.s32.totalorder %s1398_s11, %s936_s28  ;;  %s940_s30 = sshll.u32 %s1067_s23, 4  ;;  %s941_s30 = int_to_ptr.vmem [resolvable:$false] %s940_s30 }
  0x78   : > { %830 = vrcp.f32 %v283_v18  ;;  %726 = vmatpush3.bf16.xpose.msra.mxu0 %v321_v19  ;;  %p943_p1 = scmp.lt.s32.totalorder %s1398_s11, %s941_s30 }
  0x79   : > { %727 = vmatprep.subr.bf16.mxu0 %v1064_v0  ;;  %p938_p13 = pnand %p937_p4, %p1504_p5 }
  0x7b   : > { %p939_p2 = pneg %p938_p13 }
  0x80   : > { %728 = vmatpush3.bf16.xpose.msra.mxu0 %v324_v24 }
  0x81   : > { %v829_v23 = vpop.eup %828  ;;  %729 = vmatprep.subr.bf16.mxu0 %v1064_v0 }
  0x82   : > { %v831_v25 = vpop.eup %830  ;;  %743 = vpush %v829_v23 }
  0x83   : > { %745 = vpush %v831_v25 }
  0x88   : > { %730 = vmatpush3.bf16.xpose.msra.mxu0 %v327_v29 }
  0x89   : > { %731 = vmatprep.subr.bf16.mxu0 %v1064_v0 }
  0x90   : > { %732 = vmatpush3.bf16.xpose.msra.mxu0 %v330_v33 }
  0x91   : > { %733 = vmatprep.subr.bf16.mxu0 %v1064_v0 }
  0x98   : > { %734 = vmatpush3.bf16.xpose.msra.mxu0 %v333_v37 }
  0x99   : > { %735 = vmatprep.subr.bf16.mxu0 %v1064_v0 }
  0xa0   : > { %736 = vmatpush3.bf16.xpose.msra.mxu0 %v336_v41 }
  0xa1   : > { %737 = vmatprep.subr.bf16.mxu0 %v1064_v0 }
  0xa8   : > { %738 = vmatpush3.bf16.xpose.msra.mxu0 %v339_v45 }
  0xaf   : > { %740 = vmatmul.mubr.msk.bf16.vlgmr.msra.gmra.mrb[0].mxu0 %vm313_vm1, %v288_v48 }
  0xb3   : > { %s744_s7 = spop %743 }
  0xb4   : > { %v410_v52 = vstv %s744_s7  ;;  %s746_s22 = spop %745  ;;  %s942_s7 = scalar_lea.vmem %s941_s30, 512 }
  0xb5   : > { %v411_v53 = vmul.f32 %v410_v52, %v409_v49  ;;  %v406_v54 = vstv %s746_s22  ;;  %p944_p3 = scmp.lt.s32.totalorder %s942_s7, %s936_s28 }
  0xb6   : > { %v407_v55 = vmul.f32 %v406_v54, %v404_v50  ;;  %v408_v56 = vmul.f32 %v406_v54, %v405_v51 }
  0xb7   : > { %p945_p7 = por %p944_p3, %p943_p1 }
  0xb8   : > { %v412_v57 = vsub.f32 %v411_v53, %v407_v55  ;;  %v413_v58 = vsub.f32 %v411_v53, %v408_v56 }
  0xb9   : > { %p946_p12 = pnand %p945_p7, %p939_p2 }
  0xba   : > { %v414_v59 = vmul.f32 %v412_v57, %v412_v57  ;;  %v415_v60 = vmul.f32 %v413_v58, %v413_v58 }
  0xbc   : > { %v416_v61 = vmul.f32 -50.0, %v414_v59  ;;  %v417_v62 = vmul.f32 -50.0, %v415_v60 }
  0xbe   : > { %v418_v63 = vmul.f32 1.442695, %v416_v61  ;;  %v420_v0 = vmul.f32 1.442695, %v417_v62 }
  0xc0   : > { %832 = vpow2.f32 %v418_v63 }
  0xc1   : > { %834 = vpow2.f32 %v420_v0 }
  0xca   : > { %v833_v3 = vpop.eup %832 }
  0xcb   : > { %v835_v4 = vpop.eup %834  ;;  %v424_v6 = vmul.f32 %v833_v3, %v422_v1 }
  0xcc   : > { %v425_v7 = vmul.f32 %v835_v4, %v423_v2 }
  0xcd   : > { %426 = vadd.xlane.f32.xlu0 %v424_v6 }
  0xd1   : > { %428 = vadd.xlane.f32.xlu0 %v425_v7 }
 0x15a   : > { %v427_v8 = vpop.xlane.xlu0 %426 }
 0x15b   : > { %v430_v9 = vadd.f32 1e-05, %v427_v8 }
 0x15d   : > { %836 = vrcp.f32 %v430_v9 }
 0x15e   : > { %838 = vlog2.f32 %v430_v9  ;;  %v429_v10 = vpop.xlane.xlu0 %428 }
 0x15f   : > { %v431_v11 = vadd.f32 1e-05, %v429_v10 }
 0x161   : > { %840 = vrcp.f32 %v431_v11 }
 0x162   : > { %842 = vlog2.f32 %v431_v11 }
 0x167   : > { %v837_v13 = vpop.eup %836 }
 0x168   : > { %v839_v15 = vpop.eup %838  ;;  %v434_v17 = vmul.f32 %v837_v13, %v424_v6 }
 0x169   : > { %v441_v18 = vmul.f32 0.6931472, %v839_v15 }
 0x16a   : > { %vm436_vm5 = vcmp.ge.f32.partialorder %v434_v17, 0.0001 }
 0x16b   : > { %v841_v19 = vpop.eup %840  ;;  %v444_v20 = vsub.f32 %v416_v61, %v441_v18  ;;  %v438_v5 = vsel %vm436_vm5, %v434_v17, 0.0 }
 0x16c   : > { %v843_v21 = vpop.eup %842  ;;  %v435_v22 = vmul.f32 %v841_v19, %v425_v7  ;;  %v477_v41 = vadd.f32 1e-06, %v438_v5 }
 0x16d   : > { %v443_v23 = vmul.f32 0.6931472, %v843_v21  ;;  %v446_v24 = vsel %vm436_vm5, %v444_v20, -13.815511 }
 0x16e   : > { %vm437_vm6 = vcmp.ge.f32.partialorder %v435_v22, 0.0001 }
 0x16f   : > { %v445_v25 = vsub.f32 %v417_v62, %v443_v23  ;;  %v439_v43 = vsel %vm437_vm6, %v435_v22, 0.0 }
 0x170   : > { %v478_v46 = vadd.f32 1e-06, %v439_v43 }
 0x171   : > { %v1375_v26 = vsel %vm437_vm6, %v445_v25, -13.815511 }
 0x182   : > { %v375_v29 = vpop.f32.mrb[0].mxu0 }
 0x183   : > { %v741_v30 = vpop.f32.mrb[1].mxu0  ;;  %v448_v31 = vadd.f32 %v403_v28, %v375_v29 }
 0x184   : > { %v378_v32 = vpop.f32.mrb[2].mxu0 }
 0x185   : > { %450 = vmax.xlane.f32.xlu1 %v448_v31  ;;  %v742_v33 = vpop.f32.mrb[3].mxu0  ;;  %v449_v34 = vadd.f32 %v403_v28, %v378_v32 }
 0x189   : > { %452 = vmax.xlane.f32.xlu1 %v449_v34 }
 0x212   : > { %v451_v35 = vpop.xlane.xlu1 %450 }
 0x213   : > { %v454_v36 = vsub.f32 %v448_v31, %v451_v35 }
 0x215   : > { %v456_v37 = vmul.f32 1.442695, %v454_v36 }
 0x216   : > { %v453_v38 = vpop.xlane.xlu1 %452 }
 0x217   : > { %844 = vpow2.f32 %v456_v37  ;;  %v455_v39 = vsub.f32 %v449_v34, %v453_v38 }
 0x219   : > { %v458_v40 = vmul.f32 1.442695, %v455_v39 }
 0x21b   : > { %846 = vpow2.f32 %v458_v40 }
 0x221   : > { %v845_v42 = vpop.eup %844 }
 0x222   : > { %460 = vadd.xlane.f32.xlu0 %v845_v42  ;;  %v479_v44 = vmul.f32 %v845_v42, %v477_v41 }
 0x224   : > { %v481_v45 = vmul.f32 %v1330_v14, %v479_v44 }
 0x225   : > { %v847_v47 = vpop.eup %846 }
 0x226   : > { %462 = vadd.xlane.f32.xlu1 %v847_v47  ;;  %483 = vadd.xlane.f32.xlu0 %v481_v45  ;;  %v480_v48 = vmul.f32 %v847_v47, %v478_v46 }
 0x228   : > { %v482_v49 = vmul.f32 %v1330_v14, %v480_v48 }
 0x22a   : > { %485 = vadd.xlane.f32.xlu1 %v482_v49 }
 0x2af   : > { %v461_v50 = vpop.xlane.xlu0 %460 }
 0x2b0   : > { %848 = vlog2.f32 %v461_v50 }
 0x2b3   : > { %v463_v51 = vpop.xlane.xlu1 %462  ;;  %v484_v52 = vpop.xlane.xlu0 %483 }
 0x2b4   : > { %850 = vlog2.f32 %v463_v51  ;;  %v487_v53 = vmax.f32 %v484_v52, 1e-30 }
 0x2b6   : > { %852 = vrcp.f32 %v487_v53 }
 0x2b7   : > { %v486_v54 = vpop.xlane.xlu1 %485 }
 0x2b8   : > { %v488_v55 = vmax.f32 %v486_v54, 1e-30 }
 0x2ba   : > { %v849_v56 = vpop.eup %848  ;;  %854 = vrcp.f32 %v488_v55 }
 0x2bb   : > { %v465_v57 = vmul.f32 0.6931472, %v849_v56 }
 0x2bd   : > { %v468_v58 = vadd.f32 %v465_v57, %v451_v35 }
 0x2be   : > { %v851_v59 = vpop.eup %850 }
 0x2bf   : > { %v470_v60 = vsub.f32 %v375_v29, %v468_v58  ;;  %v467_v14 = vmul.f32 0.6931472, %v851_v59 }
 0x2c0   : > { %v853_v61 = vpop.eup %852 }
 0x2c1   : > { %v472_v62 = vadd.f32 %v470_v60, %v446_v24  ;;  %v469_v63 = vadd.f32 %v467_v14, %v453_v38  ;;  %v493_v0 = vmul.f32 %v853_v61, %v481_v45 }
 0x2c3   : > { %v471_v1 = vsub.f32 %v378_v32, %v469_v63  ;;  %v495_v2 = vmul.f32 %v1323_v12, %v493_v0  ;;  %475 = vst.msk [vmem:[%s267_s29] sm:$0xff] %vm474_vm8, %v472_v62 }
 0x2c4   : > { %v855_v3 = vpop.eup %854 }
 0x2c5   : > { %v473_v4 = vadd.f32 %v471_v1, %v1375_v26  ;;  %v494_v6 = vmul.f32 %v855_v3, %v482_v49  ;;  %497 = vst.msk [vmem:[%s1386_s6] sm:$0xff] %vm474_vm8, %v495_v2 }
 0x2c7   : > { %v496_v12 = vmul.f32 %v1334_v16, %v494_v6  ;;  %476 = vst.msk [vmem:[%s267_s29 + $0x8] sm:$0xff] %vm474_vm8, %v473_v4 }
 0x2c8   : > { %949 = shalt.err (!%p946_p12)
}
 0x2c9   : > { %s950_s22 = scalar_lea.hbm %s1396_s27, 256  ;;  %s954_s15 = scalar_lea.hbm %s1492_s5, 512 }
 0x2ca   : > { %p951_p8 = scmp.ne.s32.totalorder %s1396_s27, %s950_s22  ;;  %p955_p0 = scmp.lt.u32.totalorder %s1396_s27, %s1492_s5 }
 0x2cb   : > { %p956_p6 = scmp.lt.u32.totalorder %s954_s15, %s950_s22  ;;  %p958_p4 = scmp.lt.u32.totalorder %s950_s22, %s1396_s27 }
 0x2cc   : > { %p952_p11 = pnand %p951_p8, %p1504_p5 }
 0x2cd   : > { %p957_p9 = por %p956_p6, %p955_p0 }
 0x2ce   : > { %p953_p10 = pneg %p952_p11 }
 0x2cf   : > { %p959_p13 = por %p958_p4, %p957_p9 }
 0x2d1   : > { %p960_p2 = pnand %p959_p13, %p953_p10 }
 0x2d3   : > { %963 = shalt.err (!%p960_p2)
}
 0x2d4   : > { %s1068_s8 = smov 128   ;;  %s1069_s28 = smov 8   ;;  %498 = vst.msk [vmem:[%s1386_s6 + $0x8] sm:$0xff] %vm474_vm8, %v496_v12 }
 0x2d5   : > { %752 = dma.vmem_to_hbm [thread:$0]  (%p1504_p5), %s1398_s11, 256, %s1396_s27, %s505_s20, %s1068_s8, %s1068_s8, %s1069_s28  }
 0x2d6   : > { %s500_s23 = scalar_lea.sflag [#allocation7], %s1287_s9  ;;  %s964_s30 = scalar_lea.vmem %s1406_s10, 256 }
 0x2d7   : > { %p965_p1 = scmp.ne.s32.totalorder %s1406_s10, %s964_s30  ;;  %s1070_s7 = smov [#allocation10]  }
 0x2d8   : > { %s968_s22 = sshll.u32 %s1070_s7, 4  ;;  %s969_s22 = int_to_ptr.vmem [resolvable:$false] %s968_s22 }
 0x2d9   : > { %p966_p3 = pnand %p965_p1, %p1504_p5  ;;  %s970_s17 = scalar_lea.vmem %s969_s22, 512 }
 0x2da   : > { %p971_p12 = scmp.lt.s32.totalorder %s1406_s10, %s969_s22  ;;  %p972_p8 = scmp.lt.s32.totalorder %s970_s17, %s964_s30 }
 0x2db   : > { %p967_p7 = pneg %p966_p3 }
 0x2dc   : > { %p973_p11 = por %p972_p8, %p971_p12 }
 0x2de   : > { %p974_p10 = pnand %p973_p11, %p967_p7 }
 0x2e0   : > { %977 = shalt.err (!%p974_p10)
}
 0x2e1   : > { %s978_s11 = scalar_lea.hbm %s1404_s12, 256  ;;  %s982_s20 = scalar_lea.hbm %s1491_s4, 512 }
 0x2e2   : > { %p979_p0 = scmp.ne.s32.totalorder %s1404_s12, %s978_s11  ;;  %p983_p4 = scmp.lt.u32.totalorder %s1404_s12, %s1491_s4 }
 0x2e3   : > { %p984_p13 = scmp.lt.u32.totalorder %s982_s20, %s978_s11  ;;  %p986_p1 = scmp.lt.u32.totalorder %s978_s11, %s1404_s12 }
 0x2e4   : > { %p980_p6 = pnand %p979_p0, %p1504_p5 }
 0x2e5   : > { %p985_p2 = por %p984_p13, %p983_p4 }
 0x2e6   : > { %p981_p9 = pneg %p980_p6 }
 0x2e7   : > { %p987_p3 = por %p986_p1, %p985_p2 }
 0x2e9   : > { %p988_p7 = pnand %p987_p3, %p981_p9 }
 0x2eb   : > { %991 = shalt.err (!%p988_p7)
}
 0x2ec   : > { %751 = dma.vmem_to_hbm [thread:$0]  (%p1504_p5), %s1406_s10, 256, %s1404_s12, %s500_s23, %s1068_s8, %s1068_s8, %s1069_s28  }
 0x2ed PF: > { %s553_s21 = sand.u32 1, %s1036_s0   ;;  %p1505_p12 = scmp.ne.s32.totalorder %s1499_s26, 0 }
 0x2ee   : > { %p1506_p8 = scmp.ge.s32.totalorder %s1056_s16, 2  ;;  %s554_s18 = scalar_lea.sflag [#allocation7], %s553_s21 }
 0x2f0   : > { %p763_p11 = pnand %p1506_p8, %p1505_p12 }
 0x2f2   : > { %1027 = dma.done.wait (!%p763_p11), %s554_s18, 256  }
 0x2f3   : > { %1029 = vsyncadd (!%p763_p11), %s554_s18, 4294967040  ;;  %s563_s24 = scalar_lea.sflag [#allocation12], %s553_s21 }
 0x2f4   : > { %1031 = dma.done.wait (!%p763_p11), %s563_s24, 256  }
 0x2f5   : > { %1033 = vsyncadd (!%p763_p11), %s563_s24, 4294967040  ;;  %s34_s16 = sadd.s32 1, %s1056_s16   ;;  %s1507_s0 = smov %s1040_s13 }
 0x2f6   : > { %p31_p10 = scmp.ge.s32.totalorder %s34_s16, 4   ;;  %s1508_s13 = smov %s1044_s14 }
 0x2f7   : > { %s1509_s14 = smov %s1181_s25  ;;  %s1510_s15 = smov %s1052_s1 }
 0x2f8   : > { %s1511_s1 = smov %s1513_s19  ;;  %33 = sbr.rel (!%p31_p10) target bundleno = 29 (0x1d), region = 103 }
 0x2ff   :  { %568 = vsyncpa [#allocation6], 1 }
 0x300   :  { %570 = vsyncpa [#allocation6 + $0x1], 1 }
 0x301   :  { %571 = vsyncpa [#allocation9], 1 }
 0x302   :  { %573 = vsyncpa [#allocation9 + $0x1], 1 }
 0x303   :  { %574 = vsyncpa [#allocation7], 1 }
 0x304   :  { %576 = vsyncpa [#allocation7 + $0x1], 1 }
 0x305   :  { %577 = vsyncpa [#allocation12], 1 }
 0x306   :  { %579 = vsyncpa [#allocation12 + $0x1], 1 }

// kernel: conv_attention_forward.3
= control target key start
LH: loop header
LB: loop body
LE: loop exit
PB: predicated region body
PF: predicated region fallthrough
CT: control target
= control target key end

     0   :  { %9 = vsyncpa [#allocation3], 0  ;;  %s1162_s0 = inlined_call_operand.vmem [shape: f32[2,14,32], index: 0, kind: input, shape index: {}]   ;;  %s1163_s1 = inlined_call_operand.vmem [shape: f32[2,14,1], index: 1, kind: input, shape index: {}]   ;;  %s1164_s2 = inlined_call_operand.vmem [shape: bf16[3,32,64], index: 2, kind: input, shape index: {}]   ;;  %s1165_s3 = inlined_call_operand.vmem [shape: bf16[1,64,32], index: 3, kind: input, shape index: {}]   ;;  %s1166_s4 = inlined_call_operand.hbm [shape: f32[2,128,32], index: 4, kind: output, shape index: {}]  }
   0x1   :  { %11 = vsyncpa [#allocation3 + $0x1], 0  ;;  %s933_s15 = smov 0   ;;  %s935_s16 = smov 0  }
   0x2   :  { %s937_s17 = smov 0   ;;  %s939_s18 = smov 0  }
   0x3 LB: > { %s954_s19 = sadd.s32 4294967295, %s899_s18   ;;  %s678_s20 = sadd.s32 4294967294, %s899_s18   ;;  %s899_s18 = sphi %s939_s18, %s1172_s18   ;;  %s895_s17 = sphi %s937_s17, %s1171_s17   ;;  %s891_s16 = sphi %s935_s16, %s1170_s16   ;;  %s887_s15 = sphi %s933_s15, %s1169_s15  }
   0x4   : > { %s958_s21 = sadd.s32 1, %s899_s18   ;;  %s118_s22 = sadd.s32 1, %s895_s17 }
   0x5   : > { %s115_s23 = ssub.s32 %s899_s18, %s958_s21  ;;  %p128_p0 = scmp.ne.s32.totalorder %s895_s17, %s891_s16 }
   0x6   : > { %p116_p1 = scmp.eq.s32.totalorder %s115_s23, 0  ;;  %p129_p2 = scmp.eq.s32.totalorder %s954_s19, 1 }
   0x7   : > { %p134_p3 = scmp.ne.s32.totalorder %s891_s16, %s887_s15  ;;  %p135_p4 = scmp.eq.s32.totalorder %s678_s20, 1 }
   0x8   : > { %s969_s24 = scalar_select %p116_p1, %s895_s17, %s118_s22  }
   0x9   : > { %p971_p5 = por %p129_p2, %p128_p0  ;;  %p975_p6 = por %p135_p4, %p134_p3 }
   0xa   : > { %p681_p7 = scmp.ge.s32.totalorder %s899_s18, 1  ;;  %p175_p8 = scmp.lt.s32.totalorder %s899_s18, 3 }
   0xc   : > { %p176_p9 = pnand %p681_p7, %p175_p8 }
   0xd   : > { %p206_p10 = scmp.lt.s32.totalorder (!%p176_p9), %s954_s19, 1  ;;  %v901_v0 = vmov (!%p176_p9), 0   ;;  %v823_v3 = vld [vmem:[%s1164_s2 + $0x10] sm:$0xff] (!%p176_p9)   ;;  %v902_v4 = vmov (!%p176_p9), 0.0   ;;  %v824_v5 = vld [vmem:[%s1164_s2 + $0x18] sm:$0xff] (!%p176_p9)   ;;  %vm903_vm0 = vmmov (!%p176_p9), 0  }
   0xe   : > { %179 = sbr.rel (%p176_p9) target bundleno = 682 (0x2aa), region = 36  ;;  %822 = vset.pattern.permute.xlu0 (!%p176_p9), %v901_v0  ;;  %731 = vmatprep.subr.bf16.mxu0 (!%p176_p9), %v902_v4  ;;  %vm429_vm1 = vcmask (!%p176_p9), 1046528   ;;  %vm442_vm2 = vcmask (!%p176_p9), 7168   ;;  %vm444_vm3 = vcmask (!%p176_p9), 3072   ;;  %vm262_vm4 = vcmask (!%p176_p9), 261120   ;;  %v825_v25 = vld [vmem:[%s1164_s2] sm:$0xff] (!%p176_p9)  }
   0xf   : > { %755 = vmatprep.subr.bf16.mxu1 (!%p176_p9), %v902_v4  ;;  %732 = vmatpush3.bf16.msra.mxu0 (!%p176_p9), %v823_v3  ;;  %v826_v27 = vld [vmem:[%s1164_s2 + $0x8] sm:$0xff] (!%p176_p9)   ;;  %v827_v28 = vld [vmem:[%s1164_s2 + $0x20] sm:$0xff] (!%p176_p9)   ;;  %v831_v40 = vld [vmem:[%s1165_s3 + $0x10] sm:$0xff] (!%p176_p9)   ;;  %vm459_vm5 = vcmask (!%p176_p9), 519168   ;;  %vm457_vm6 = vcmask (!%p176_p9), 523264   ;;  %s904_s22 = smov (!%p176_p9), 1.0  }
  0x10   : > { %733 = vmatprep.subr.bf16.mxu0 (!%p176_p9), %v902_v4  ;;  %735 = vmatprep.mubr.msk.bf16.mxu0 (!%p176_p9), %vm903_vm0, %v902_v4  ;;  %v828_v29 = vld [vmem:[%s1164_s2 + $0x28] sm:$0xff] (!%p176_p9)   ;;  %v829_v38 = vld [vmem:[%s1165_s3] sm:$0xff] (!%p176_p9)   ;;  %v832_v41 = vld [vmem:[%s1165_s3 + $0x18] sm:$0xff] (!%p176_p9)   ;;  %vm572_vm7 = vcmask (!%p176_p9), 1043456   ;;  %s905_s7 = smov (!%p176_p9), [#allocation2]  }
  0x11   : > { %763 = vmatprep.mubr.msk.bf16.mxu1 (!%p176_p9), %vm903_vm0, %v902_v4  ;;  %756 = vmatpush3.bf16.msra.mxu1 (!%p176_p9), %v829_v38  ;;  %v830_v39 = vld [vmem:[%s1165_s3 + $0x8] sm:$0xff] (!%p176_p9)   ;;  %s841_s8 = sshll.u32 (!%p176_p9), %s905_s7, 4  ;;  %s842_s8 = int_to_ptr.vmem [resolvable:$false] %s841_s8 }
  0x12   : > { %757 = vmatprep.subr.bf16.mxu1 (!%p176_p9), %v902_v4  ;;  %s843_s9 = scalar_lea.vmem (!%p176_p9), %s842_s8, 4096 }
  0x13   : > { %734 = vmatpush3.bf16.msra.mxu0 (!%p176_p9), %v824_v5 }
  0x14   : > { %739 = vmatprep.subr.bf16.mxu0 (!%p176_p9), %v902_v4 }
  0x15   : > { %s983_s27 = scalar_select %p206_p10, %s954_s19, 1  ;;  %758 = vmatpush3.bf16.msra.mxu1 %v830_v39 }
  0x16   : > { %759 = vmatprep.subr.bf16.mxu1 %v902_v4 }
  0x17   : > { %s714_s28 = sshll.u32 %s983_s27, 4  ;;  %s716_s27 = sshll.u32 %s954_s19, 11 }
  0x18   : > { %s215_s5 = scalar_lea.vmem %s1163_s1, %s714_s28  ;;  %s210_s12 = scalar_lea.vmem %s1162_s0, %s714_s28 }
  0x19   : > { %v217_v1 = vld [vmem:[%s215_s5] sm:$0xff]  ;;  %v218_v2 = vld [vmem:[%s215_s5 + $0x8] sm:$0x3f]  ;;  %760 = vmatpush3.bf16.msra.mxu1 %v831_v40  ;;  %s1113_s5 = scalar_lea.hbm %s1166_s4, %s716_s27 }
  0x1a   : > { %223 = vperm.xlu0 %822, %v217_v1   ;;  %v437_v6 = vrot.slane %v217_v1, 1  ;;  %v438_v7 = vrot.slane %v218_v2, 1  ;;  %v219_v13 = vld [vmem:[%s210_s12] sm:$0xff]  ;;  %v220_v14 = vld [vmem:[%s210_s12 + $0x8] sm:$0x3f]  ;;  %761 = vmatprep.subr.bf16.mxu1 %v902_v4  ;;  %s203_s12 = sand.u32 1, %s891_s16  }
  0x1b   : > { %s682_s13 = sshll.u32 %s203_s12, 7  ;;  %s1121_s19 = scalar_lea.sflag [#allocation3], %s203_s12 }
  0x1c   : > { %v439_v8 = vsel %vm429_vm1, %v437_v6, %v438_v7  ;;  %v445_v10 = vsel %vm444_vm3, %v438_v7, 0.0  ;;  %s1053_s14 = scalar_lea.vmem [#allocation2], %s682_s13 }
  0x1d   : > { %v443_v9 = vsel %vm442_vm2, %v439_v8, 0.0  ;;  %762 = vmatpush3.bf16.msra.mxu1 %v832_v41  ;;  %576 = vst.msk [vmem:[%s1053_s14 + $0x10] sm:$0xff] %vm262_vm4, %v902_v4  ;;  %577 = vst.msk [vmem:[%s1053_s14 + $0x18] sm:$0xff] %vm262_vm4, %v902_v4  ;;  %s604_s28 = sshll.u32 %s1053_s14, 4  ;;  %s1115_s28 = int_to_ptr.vmem [resolvable:$true] %s604_s28 }
  0x1e   : > { %228 = vperm.xlu0 %822, %v218_v2   ;;  %v446_v11 = vadd.f32 %v445_v10, %v443_v9  ;;  %578 = vst.msk [vmem:[%s1053_s14 + $0x20] sm:$0xff] %vm262_vm4, %v902_v4  ;;  %579 = vst.msk [vmem:[%s1053_s14 + $0x28] sm:$0xff] %vm262_vm4, %v902_v4  ;;  %s837_s6 = scalar_lea.vmem %s1115_s28, 2048  ;;  %p844_p0 = scmp.lt.s32.totalorder %s1115_s28, %s842_s8 }
  0x1f   : > { %580 = vst.msk [vmem:[%s1053_s14 + $0x30] sm:$0xff] %vm262_vm4, %v902_v4  ;;  %581 = vst.msk [vmem:[%s1053_s14 + $0x38] sm:$0xff] %vm262_vm4, %v902_v4  ;;  %p838_p11 = scmp.ne.s32.totalorder %s1115_s28, %s837_s6  ;;  %p845_p1 = scmp.lt.s32.totalorder %s843_s9, %s837_s6 }
  0x20   : > { %447 = vadd.xlane.f32.xlu1 %v446_v11  ;;  %582 = vst.msk [vmem:[%s1053_s14 + $0x40] sm:$0xff] %vm262_vm4, %v902_v4  ;;  %583 = vst.msk [vmem:[%s1053_s14 + $0x48] sm:$0xff] %vm262_vm4, %v902_v4 }
  0x21   : > { %584 = vst.msk [vmem:[%s1053_s14 + $0x50] sm:$0xff] %vm262_vm4, %v902_v4  ;;  %585 = vst.msk [vmem:[%s1053_s14 + $0x58] sm:$0xff] %vm262_vm4, %v902_v4  ;;  %p839_p12 = pnand %p838_p11, %p971_p5  ;;  %p846_p2 = por %p845_p1, %p844_p0 }
  0x22   : > { %586 = vst.msk [vmem:[%s1053_s14 + $0x60] sm:$0xff] %vm262_vm4, %v902_v4  ;;  %587 = vst.msk [vmem:[%s1053_s14 + $0x68] sm:$0xff] %vm262_vm4, %v902_v4 }
  0x23   : > { %588 = vst.msk [vmem:[%s1053_s14 + $0x70] sm:$0xff] %vm262_vm4, %v902_v4  ;;  %589 = vst.msk [vmem:[%s1053_s14 + $0x78] sm:$0xff] %vm262_vm4, %v902_v4  ;;  %p840_p13 = pneg %p839_p12 }
  0x25   : > { %p847_p3 = pnand %p846_p2, %p840_p13 }
  0x99   : > { %v224_v12 = vpop.permute.xlu0 %223 }
  0x9a   : > { %v231_v16 = vmul.f32 %v224_v12, %v219_v13  ;;  %v430_v17 = vrot.slane %v224_v12, 1 }
  0x9d   : > { %v229_v15 = vpop.permute.xlu0 %228 }
  0x9e   : > { %v232_v18 = vmul.f32 %v229_v15, %v220_v14  ;;  %v1007_v19 = vrot.slane %v229_v15, 1 }
  0xa0   : > { %v233_v20 = vpack.c.bf16 %v232_v18, %v231_v16  ;;  %v1011_v21 = vsel %vm429_vm1, %v430_v17, %v1007_v19 }
  0xa2   : > { %v246_v22 = vshll.u32 %v233_v20, 16  ;;  %v244_v23 = vshrl.u32 %v233_v20, 16  ;;  %v368_v30 = vrot.slane %v233_v20, 1 }
  0xa4   : > { %v248_v24 = vrot.slane %v246_v22, 1 }
  0xa6   : > { %v249_v26 = vor.u32 %v248_v24, %v244_v23 }
  0xa8   : > { %736 = vmatmul.mubr.msk.bf16.vlgmr.msra.gmra.mrb[0].mxu0 %vm262_vm4, %v249_v26 }
  0xa9   : > { %740 = vmatpush3.bf16.msra.mxu0 %v825_v25  ;;  %743 = vmatprep.mubr.msk.bf16.mxu0 %vm903_vm0, %v902_v4 }
  0xaa   : > { %741 = vmatprep.subr.bf16.mxu0 %v902_v4 }
  0xad   : > { %742 = vmatpush3.bf16.msra.mxu0 %v826_v27  ;;  %v448_v31 = vpop.xlane.xlu1 %447 }
  0xae   : > { %747 = vmatprep.subr.bf16.mxu0 %v902_v4  ;;  %v449_v32 = vrot.slane %v448_v31, 4 }
  0xb0   : > { %v450_v33 = vadd.f32 %v449_v32, %v448_v31 }
  0xb2   : > { %v451_v34 = vrot.slane %v450_v33, 2 }
  0xb4   : > { %744 = vmatmul.mubr.msk.bf16.vlgmr.msra.gmra.mrb[0].mxu0 %vm262_vm4, %v233_v20  ;;  %v452_v35 = vadd.f32 %v451_v34, %v450_v33 }
  0xb5   : > { %748 = vmatpush3.bf16.msra.mxu0 %v827_v28  ;;  %751 = vmatprep.mubr.msk.bf16.mxu0 %vm903_vm0, %v902_v4 }
  0xb6   : > { %749 = vmatprep.subr.bf16.mxu0 %v902_v4  ;;  %v453_v36 = vrot.slane %v452_v35, 1 }
  0xb8   : > { %v454_v37 = vadd.f32 %v453_v36, %v452_v35 }
  0xb9   : > { %750 = vmatpush3.bf16.msra.mxu0 %v828_v29 }
  0xba   : > { %775 = vpush %v454_v37 }
  0xc0   : > { %752 = vmatmul.mubr.msk.bf16.vlgmr.msra.gmra.mrb[0].mxu0 %vm262_vm4, %v368_v30 }
  0xeb   : > { %s776_s20 = spop %775 }
  0xec   : > { %s456_s23 = smax.f32 %s904_s22, %s776_s20 }
  0xed   : > { %v468_v54 = vstv %s456_s23 }
  0xee   : > { %833 = vrcp.f32 %v468_v54 }
  0xf8   : > { %v834_v6 = vpop.eup %833 }
 0x193   : > { %v418_v42 = vpop.f32.mrb[0].mxu0 }
 0x194   : > { %v427_v43 = vmax.f32 %v418_v42, 0.0  ;;  %v753_v44 = vpop.f32.mrb[1].mxu0 }
 0x195   : > { %v421_v45 = vpop.f32.mrb[2].mxu0 }
 0x196   : > { %v435_v46 = vmul.f32 %v1011_v21, %v427_v43  ;;  %v428_v47 = vmax.f32 %v421_v45, 0.0  ;;  %v754_v48 = vpop.f32.mrb[3].mxu0 }
 0x198   : > { %v471_v49 = vmul.f32 %v435_v46, %v435_v46  ;;  %v436_v50 = vmul.f32 %v1007_v19, %v428_v47  ;;  %v458_v53 = vsel %vm457_vm6, %v435_v46, 0.0 }
 0x19a   : > { %v460_v51 = vsel %vm459_vm5, %v436_v50, 0.0  ;;  %v472_v52 = vmul.f32 %v436_v50, %v436_v50  ;;  %v473_v57 = vsel %vm457_vm6, %v471_v49, 0.0 }
 0x19b   : > { %v461_v55 = vadd.f32 %v460_v51, %v458_v53 }
 0x19c   : > { %v474_v56 = vsel %vm459_vm5, %v472_v52, 0.0 }
 0x19d   : > { %v462_v58 = vrot.slane %v461_v55, 4  ;;  %v475_v59 = vadd.f32 %v474_v56, %v473_v57 }
 0x19f   : > { %v463_v60 = vadd.f32 %v462_v58, %v461_v55  ;;  %v476_v61 = vrot.slane %v475_v59, 4 }
 0x1a1   : > { %v464_v62 = vrot.slane %v463_v60, 2  ;;  %v477_v63 = vadd.f32 %v476_v61, %v475_v59 }
 0x1a3   : > { %v465_v0 = vadd.f32 %v464_v62, %v463_v60  ;;  %v478_v1 = vrot.slane %v477_v63, 2 }
 0x1a5   : > { %v466_v2 = vrot.slane %v465_v0, 1  ;;  %v479_v3 = vadd.f32 %v478_v1, %v477_v63 }
 0x1a7   : > { %v467_v4 = vadd.f32 %v466_v2, %v465_v0  ;;  %v480_v5 = vrot.slane %v479_v3, 1 }
 0x1a9   : > { %v470_v7 = vmul.f32 %v834_v6, %v467_v4  ;;  %v481_v8 = vadd.f32 %v480_v5, %v479_v3 }
 0x1ab   : > { %v482_v9 = vmul.f32 %v834_v6, %v481_v8  ;;  %v483_v10 = vmul.f32 %v470_v7, %v470_v7  ;;  %v485_v11 = vsub.f32 %v427_v43, %v470_v7  ;;  %v486_v12 = vsub.f32 %v428_v47, %v470_v7 }
 0x1ad   : > { %v484_v13 = vsub.f32 %v482_v9, %v483_v10 }
 0x1af   : > { %v487_v14 = vadd.f32 1e-05, %v484_v13 }
 0x1b1   : > { %835 = vrsqrt.f32 %v487_v14 }
 0x1bb   : > { %v836_v15 = vpop.eup %835 }
 0x1bc   : > { %v489_v16 = vmul.f32 %v836_v15, %v485_v11  ;;  %v490_v17 = vmul.f32 %v836_v15, %v486_v12 }
 0x1be   : > { %v491_v18 = vmul.f32 %v489_v16, %v1011_v21  ;;  %v492_v20 = vmul.f32 %v490_v17, %v1007_v19 }
 0x1c0   : > { %v493_v22 = vmul.f32 %v491_v18, %v1011_v21  ;;  %v494_v23 = vmul.f32 %v492_v20, %v1007_v19 }
 0x1c2   : > { %v495_v24 = vpack.c.bf16 %v494_v23, %v493_v22 }
 0x1c4   : > { %764 = vmatmul.mubr.msk.bf16.vlgmr.msra.gmra.mrb[0].mxu1 %vm457_vm6, %v495_v24 }
 0x297   : > { %v565_v25 = vpop.f32.mrb[0].mxu1 }
 0x298   : > { %574 = vst.msk [vmem:[%s1053_s14] sm:$0xff] %vm262_vm4, %v565_v25  ;;  %v765_v26 = vpop.f32.mrb[1].mxu1 }
 0x299   : > { %v568_v19 = vpop.f32.mrb[2].mxu1 }
 0x29a   : > { %v573_v21 = vsel %vm572_vm7, %v568_v19, 0.0  ;;  %v766_v27 = vpop.f32.mrb[3].mxu1 }
 0x29b   : > { %575 = vst.msk [vmem:[%s1053_s14 + $0x8] sm:$0xff] %vm262_vm4, %v573_v21 }
 0x29c   : > { %850 = shalt.err (!%p847_p3)
}
 0x29d   : > { %s851_s10 = scalar_lea.hbm %s1113_s5, 2048  ;;  %s855_s13 = scalar_lea.hbm %s1166_s4, 4096 }
 0x29e   : > { %p852_p4 = scmp.ne.s32.totalorder %s1113_s5, %s851_s10  ;;  %p856_p9 = scmp.lt.u32.totalorder %s1113_s5, %s1166_s4 }
 0x29f   : > { %p857_p10 = scmp.lt.u32.totalorder %s855_s13, %s851_s10  ;;  %p859_p12 = scmp.lt.u32.totalorder %s851_s10, %s1113_s5 }
 0x2a0   : > { %p853_p7 = pnand %p852_p4, %p971_p5 }
 0x2a1   : > { %p858_p11 = por %p857_p10, %p856_p9 }
 0x2a2   : > { %p854_p8 = pneg %p853_p7 }
 0x2a3   : > { %p860_p13 = por %p859_p12, %p858_p11 }
 0x2a5   : > { %p861_p0 = pnand %p860_p13, %p854_p8 }
 0x2a7   : > { %864 = shalt.err (!%p861_p0)
}
 0x2a8   : > { %s906_s22 = smov 128   ;;  %s907_s23 = smov 8  }
 0x2a9   : > { %777 = dma.vmem_to_hbm [thread:$0]  (%p971_p5), %s1115_s28, 2048, %s1113_s5, %s1121_s19, %s906_s22, %s906_s22, %s907_s23  }
 0x2aa PF: > { %p783_p1 = scmp.ge.s32.totalorder %s899_s18, 2  ;;  %s619_s27 = sand.u32 1, %s887_s15  }
 0x2ab   : > { %s620_s29 = scalar_lea.sflag [#allocation3], %s619_s27 }
 0x2ac   : > { %p780_p2 = pnand %p783_p1, %p975_p6 }
 0x2ae   : > { %882 = dma.done.wait (!%p780_p2), %s620_s29, 2048  }
 0x2af   : > { %884 = vsyncadd (!%p780_p2), %s620_s29, 4294965248  ;;  %p14_p3 = scmp.ge.s32.totalorder %s958_s21, 4   ;;  %s1169_s15 = smov %s891_s16 }
 0x2b0   : > { %s1170_s16 = smov %s895_s17  ;;  %s1171_s17 = smov %s969_s24 }
 0x2b1   : > { %s1172_s18 = smov %s958_s21  ;;  %16 = sbr.rel (!%p14_p3) target bundleno = 3 (0x3), region = 76 }
 0x2b8   :  { %625 = vsyncpa [#allocation3], 1 }
 0x2b9   :  { %627 = vsyncpa [#allocation3 + $0x1], 1 }

// kernel: conv_attention_forward.4
= control target key start
LH: loop header
LB: loop body
LE: loop exit
PB: predicated region body
PF: predicated region fallthrough
CT: control target
= control target key end

     0   :  { %10 = vsyncpa [#allocation3], 0  ;;  %s1413_s0 = inlined_call_operand.vmem [shape: f32[2,18,16], index: 0, kind: input, shape index: {}]   ;;  %s1414_s1 = inlined_call_operand.vmem [shape: f32[2,18,1], index: 1, kind: input, shape index: {}]   ;;  %s1415_s2 = inlined_call_operand.vmem [shape: bf16[3,16,32], index: 2, kind: input, shape index: {}]   ;;  %s1416_s3 = inlined_call_operand.vmem [shape: bf16[3,32,16], index: 3, kind: input, shape index: {}]   ;;  %s1417_s4 = inlined_call_operand.vmem [shape: bf16[1,16,32], index: 4, kind: input, shape index: {}]   ;;  %s1418_s5 = inlined_call_operand.hbm [shape: f32[2,16,32], index: 5, kind: output, shape index: {}]  }
   0x1   :  { %12 = vsyncpa [#allocation3 + $0x1], 0  ;;  %s1203_s18 = smov 0   ;;  %s1205_s19 = smov 0  }
   0x2   :  { %s1207_s20 = smov 0   ;;  %s1209_s21 = smov 0  }
   0x3 LB: > { %s1224_s22 = sadd.s32 4294967295, %s1164_s21   ;;  %s913_s23 = sadd.s32 4294967294, %s1164_s21   ;;  %s1164_s21 = sphi %s1209_s21, %s1424_s21   ;;  %s1160_s20 = sphi %s1207_s20, %s1423_s20   ;;  %s1156_s19 = sphi %s1205_s19, %s1422_s19   ;;  %s1152_s18 = sphi %s1203_s18, %s1421_s18  }
   0x4   : > { %s1228_s24 = sadd.s32 1, %s1164_s21   ;;  %s140_s25 = sadd.s32 1, %s1160_s20 }
   0x5   : > { %s137_s26 = ssub.s32 %s1164_s21, %s1228_s24  ;;  %p150_p0 = scmp.ne.s32.totalorder %s1160_s20, %s1156_s19 }
   0x6   : > { %p138_p1 = scmp.eq.s32.totalorder %s137_s26, 0  ;;  %p151_p2 = scmp.eq.s32.totalorder %s1224_s22, 1 }
   0x7   : > { %p156_p3 = scmp.ne.s32.totalorder %s1156_s19, %s1152_s18  ;;  %p157_p4 = scmp.eq.s32.totalorder %s913_s23, 1 }
   0x8   : > { %s1239_s27 = scalar_select %p138_p1, %s1160_s20, %s140_s25  }
   0x9   : > { %p1241_p5 = por %p151_p2, %p150_p0  ;;  %p1245_p6 = por %p157_p4, %p156_p3 }
   0xa   : > { %p916_p7 = scmp.ge.s32.totalorder %s1164_s21, 1  ;;  %p200_p8 = scmp.lt.s32.totalorder %s1164_s21, 3 }
   0xc   : > { %p201_p9 = pnand %p916_p7, %p200_p8 }
   0xd   : > { %p233_p10 = scmp.lt.s32.totalorder (!%p201_p9), %s1224_s22, 1  ;;  %v1166_v0 = vmov (!%p201_p9), 0   ;;  %v1086_v4 = vld [vmem:[%s1415_s2 + $0x8] sm:$0xff] (!%p201_p9)   ;;  %v1167_v5 = vmov (!%p201_p9), 0.0   ;;  %vm1168_vm0 = vmmov (!%p201_p9), 0   ;;  %vm393_vm1 = vcmask (!%p201_p9), 1046528  }
   0xe   : > { %204 = sbr.rel (%p201_p9) target bundleno = 977 (0x3d1), region = 40  ;;  %1084 = vset.pattern.permute.xlu0 (!%p201_p9), %v1166_v0  ;;  %1085 = vset.pattern.permute.xlu1 (!%p201_p9), %v1166_v0  ;;  %vm468_vm2 = vcmask (!%p201_p9), 7168   ;;  %vm275_vm3 = vsmask.f32 (!%p201_p9), 7424  ;;  %vm294_vm4 = vcmask (!%p201_p9), 130048   ;;  %v1087_v36 = vld [vmem:[%s1415_s2] sm:$0xff] (!%p201_p9)  }
   0xf   : > { %972 = vmatprep.subr.bf16.mxu0 (!%p201_p9), %v1167_v5  ;;  %974 = vmatprep.mubr.msk.bf16.mxu0 (!%p201_p9), %vm1168_vm0, %v1167_v5  ;;  %v1088_v38 = vld [vmem:[%s1415_s2 + $0x10] sm:$0xff] (!%p201_p9)   ;;  %v1090_v50 = vld [vmem:[%s1416_s3 + $0x18] sm:$0xff] (!%p201_p9)   ;;  %vm482_vm5 = vcmask (!%p201_p9), 261120   ;;  %s1169_s8 = smov (!%p201_p9), 1.0   ;;  %vm521_vm6 = vcmask (!%p201_p9), 1040384   ;;  %s230_s26 = sand.u32 (!%p201_p9), 1, %s1156_s19  }
  0x10   : > { %973 = vmatpush3.bf16.msra.mxu0 (!%p201_p9), %v1086_v4  ;;  %990 = vmatprep.subr.bf16.mxu1 (!%p201_p9), %v1167_v5  ;;  %v1089_v49 = vld [vmem:[%s1416_s3 + $0x10] sm:$0xff] (!%p201_p9)   ;;  %s1372_s12 = scalar_lea.sflag (!%p201_p9), [#allocation3], %s230_s26  ;;  %s1170_s13 = smov (!%p201_p9), [#allocation2]  }
  0x11   : > { %978 = vmatprep.subr.bf16.mxu0 (!%p201_p9), %v1167_v5  ;;  %994 = vmatprep.mubr.msk.bf16.mxu1 (!%p201_p9), %vm1168_vm0, %v1167_v5 }
  0x12   : > { %991 = vmatpush3.bf16.msra.mxu1 (!%p201_p9), %v1089_v49 }
  0x13   : > { %992 = vmatprep.subr.bf16.mxu1 (!%p201_p9), %v1167_v5 }
  0x15   : > { %s1253_s30 = scalar_select %p233_p10, %s1224_s22, 1 }
  0x16   : > { %993 = vmatpush3.bf16.msra.mxu1 %v1090_v50  ;;  %v1091_v50 = vld [vmem:[%s1416_s3] sm:$0xff]  }
  0x17   : > { %s1036_s6 = smul.u32 24, %s1253_s30  ;;  %998 = vmatprep.subr.bf16.mxu1 %v1167_v5  ;;  %s917_s30 = sshll.u32 %s230_s26, 4 }
  0x19   : > { %s242_s9 = scalar_lea.vmem %s1414_s1, %s1036_s6  ;;  %s237_s14 = scalar_lea.vmem %s1413_s0, %s1036_s6 }
  0x1a   : > { %v244_v1 = vld [vmem:[%s242_s9] sm:$0xff]  ;;  %v246_v2 = vld [vmem:[%s242_s9 + $0x10] sm:$0x3]  ;;  %v245_v3 = vld [vmem:[%s242_s9 + $0x8] sm:$0xff]  ;;  %s232_s6 = scalar_lea.vmem [#allocation2], %s917_s30 }
  0x1b   : > { %252 = vperm.xlu0 %1084, %v244_v1   ;;  %262 = vperm.xlu1 %1085, %v246_v2   ;;  %v461_v6 = vrot.slane %v244_v1, 1  ;;  %v464_v7 = vrot.slane %v246_v2, 1  ;;  %v462_v8 = vrot.slane %v245_v3, 1  ;;  %v249_v14 = vld [vmem:[%s237_s14 + $0x10] sm:$0x3]  ;;  %v247_v17 = vld [vmem:[%s237_s14] sm:$0xff] }
  0x1c   : > { %v248_v19 = vld [vmem:[%s237_s14 + $0x8] sm:$0xff]  ;;  %s1106_s14 = sshll.u32 %s1170_s13, 4  ;;  %s1107_s14 = int_to_ptr.vmem [resolvable:$false] %s1106_s14 }
  0x1d   : > { %v463_v9 = vsel %vm393_vm1, %v461_v6, %v462_v8  ;;  %v465_v10 = vsel %vm393_vm1, %v462_v8, %v464_v7  ;;  %s1108_s15 = scalar_lea.vmem %s1107_s14, 512 }
  0x1e   : > { %v469_v11 = vsel %vm468_vm2, %v463_v9, 0.0  ;;  %v470_v12 = vsel %vm468_vm2, %v465_v10, 0.0 }
  0x1f   : > { %257 = vperm.xlu0 %1084, %v245_v3   ;;  %v471_v13 = vadd.f32 %v470_v12, %v469_v11 }
  0x3f   : > { %472 = vadd.xlane.f32.xlu1 %v471_v13 }
  0x9a   : > { %v253_v15 = vpop.permute.xlu0 %252  ;;  %v263_v16 = vpop.permute.xlu1 %262 }
  0x9b   : > { %v267_v18 = vmul.f32 %v263_v16, %v249_v14  ;;  %v455_v20 = vrot.slane %v263_v16, 1  ;;  %v265_v21 = vmul.f32 %v253_v15, %v247_v17  ;;  %v452_v23 = vrot.slane %v253_v15, 1 }
  0x9d   : > { %v271_v24 = vpack.c.bf16 %v267_v18, %v267_v18 }
  0x9e   : > { %v258_v22 = vpop.permute.xlu0 %257 }
  0x9f   : > { %v266_v25 = vmul.f32 %v258_v22, %v248_v19  ;;  %v453_v26 = vrot.slane %v258_v22, 1  ;;  %v284_v27 = vshll.u32 %v271_v24, 16  ;;  %v395_v39 = vrot.slane %v271_v24, 1 }
  0xa1   : > { %v268_v28 = vpack.c.bf16 %v266_v25, %v265_v21  ;;  %v1275_v29 = vsel %vm393_vm1, %v452_v23, %v453_v26  ;;  %v1278_v30 = vsel %vm393_vm1, %v453_v26, %v455_v20  ;;  %v286_v32 = vrot.slane %v284_v27, 1 }
  0xa3   : > { %v279_v31 = vshll.u32 %v268_v28, 16  ;;  %v277_v33 = vshrl.u32 %v268_v28, 16  ;;  %v394_v40 = vrot.slane %v268_v28, 1 }
  0xa5   : > { %v281_v34 = vrot.slane %v279_v31, 1  ;;  %v396_v41 = vsel %vm393_vm1, %v394_v40, %v395_v39 }
  0xa7   : > { %v282_v35 = vor.u32 %v281_v34, %v277_v33 }
  0xa9   : > { %v287_v37 = vsel %vm275_vm3, %v282_v35, %v286_v32 }
  0xaa   : > { %975 = vmatmul.mubr.msk.bf16.vlgmr.msra.gmra.mrb[0].mxu0 %vm294_vm4, %v287_v37 }
  0xab   : > { %979 = vmatpush3.bf16.msra.mxu0 %v1087_v36  ;;  %980 = vmatprep.mubr.msk.bf16.mxu0 %vm1168_vm0, %v1167_v5 }
  0xac   : > { %984 = vmatprep.subr.bf16.mxu0 %v1167_v5 }
  0xb6   : > { %981 = vmatmul.mubr.msk.bf16.vlgmr.msra.gmra.mrb[0].mxu0 %vm294_vm4, %v268_v28 }
  0xb7   : > { %985 = vmatpush3.bf16.msra.mxu0 %v1088_v38  ;;  %986 = vmatprep.mubr.msk.bf16.mxu0 %vm1168_vm0, %v1167_v5 }
  0xb8   : > { %1014 = vmatprep.subr.bf16.mxu0 %v1167_v5 }
  0xc2   : > { %987 = vmatmul.mubr.msk.bf16.vlgmr.msra.gmra.mrb[0].mxu0 %vm294_vm4, %v396_v41 }
  0xc3   : > { %1016 = vmatprep.mubr.msk.bf16.mxu0 %vm1168_vm0, %v1167_v5 }
  0xcc   : > { %v473_v42 = vpop.xlane.xlu1 %472 }
  0xcd   : > { %v474_v43 = vrot.slane %v473_v42, 4 }
  0xcf   : > { %v475_v44 = vadd.f32 %v474_v43, %v473_v42 }
  0xd1   : > { %v476_v45 = vrot.slane %v475_v44, 2 }
  0xd3   : > { %v477_v46 = vadd.f32 %v476_v45, %v475_v44 }
  0xd5   : > { %v478_v47 = vrot.slane %v477_v46, 1 }
  0xd7   : > { %v479_v48 = vadd.f32 %v478_v47, %v477_v46 }
  0xd9   : > { %1037 = vpush %v479_v48 }
 0x10a   : > { %s1038_s7 = spop %1037 }
 0x10b   : > { %s481_s9 = smax.f32 %s1169_s8, %s1038_s7  ;;  %s839_s7 = sshll.u32 %s232_s6, 4  ;;  %s1363_s7 = int_to_ptr.vmem [resolvable:$true] %s839_s7 }
 0x10c   : > { %v492_v0 = vstv %s481_s9  ;;  %s954_s8 = sshll.u32 %s1224_s22, 8  ;;  %s1102_s22 = scalar_lea.vmem %s1363_s7, 256 }
 0x10d   : > { %1096 = vrcp.f32 %v492_v0  ;;  %s1369_s11 = scalar_lea.hbm %s1418_s5, %s954_s8  ;;  %p1103_p11 = scmp.ne.s32.totalorder %s1363_s7, %s1102_s22 }
 0x10e   : > { %p1109_p0 = scmp.lt.s32.totalorder %s1363_s7, %s1107_s14  ;;  %p1110_p1 = scmp.lt.s32.totalorder %s1108_s15, %s1102_s22 }
 0x10f   : > { %p1104_p12 = pnand %p1103_p11, %p1241_p5 }
 0x110   : > { %p1111_p2 = por %p1110_p1, %p1109_p0 }
 0x111   : > { %p1105_p13 = pneg %p1104_p12 }
 0x113   : > { %p1112_p3 = pnand %p1111_p2, %p1105_p13 }
 0x117   : > { %v1313_v16 = vpop.eup %1096 }
 0x195   : > { %v440_v51 = vpop.f32.mrb[0].mxu0 }
 0x196   : > { %v449_v52 = vmax.f32 %v440_v51, 0.0  ;;  %v988_v53 = vpop.f32.mrb[1].mxu0 }
 0x197   : > { %v443_v54 = vpop.f32.mrb[2].mxu0  ;;  %v1093_v53 = vld [vmem:[%s1416_s3 + $0x20] sm:$0xff]  }
 0x198   : > { %v459_v55 = vmul.f32 %v1275_v29, %v449_v52  ;;  %v450_v56 = vmax.f32 %v443_v54, 0.0  ;;  %v989_v57 = vpop.f32.mrb[3].mxu0  ;;  %v1094_v54 = vld [vmem:[%s1416_s3 + $0x28] sm:$0xff]  }
 0x19a   : > { %v495_v58 = vmul.f32 %v459_v55, %v459_v55  ;;  %v460_v59 = vmul.f32 %v1278_v30, %v450_v56  ;;  %v483_v60 = vsel %vm482_vm5, %v459_v55, 0.0  ;;  %v1095_v55 = vld [vmem:[%s1417_s4] sm:$0xff]  }
 0x19b   : > { %1015 = vmatpush3.bf16.msra.mxu0 %v1095_v55 }
 0x19c   : > { %v484_v61 = vsel %vm482_vm5, %v460_v59, 0.0  ;;  %v496_v62 = vmul.f32 %v460_v59, %v460_v59  ;;  %v497_v1 = vsel %vm482_vm5, %v495_v58, 0.0 }
 0x19d   : > { %v485_v63 = vadd.f32 %v484_v61, %v483_v60 }
 0x19e   : > { %v498_v2 = vsel %vm482_vm5, %v496_v62, 0.0 }
 0x19f   : > { %v486_v3 = vrot.slane %v485_v63, 4  ;;  %v499_v4 = vadd.f32 %v498_v2, %v497_v1 }
 0x1a1   : > { %v487_v6 = vadd.f32 %v486_v3, %v485_v63  ;;  %v500_v7 = vrot.slane %v499_v4, 4 }
 0x1a3   : > { %v488_v8 = vrot.slane %v487_v6, 2  ;;  %v501_v9 = vadd.f32 %v500_v7, %v499_v4 }
 0x1a5   : > { %v489_v10 = vadd.f32 %v488_v8, %v487_v6  ;;  %v502_v11 = vrot.slane %v501_v9, 2 }
 0x1a7   : > { %v490_v12 = vrot.slane %v489_v10, 1  ;;  %v503_v13 = vadd.f32 %v502_v11, %v501_v9 }
 0x1a9   : > { %v491_v14 = vadd.f32 %v490_v12, %v489_v10  ;;  %v504_v15 = vrot.slane %v503_v13, 1 }
 0x1ab   : > { %v505_v17 = vadd.f32 %v504_v15, %v503_v13  ;;  %v494_v18 = vmul.f32 %v1313_v16, %v491_v14 }
 0x1ad   : > { %v506_v19 = vmul.f32 %v1313_v16, %v505_v17  ;;  %v507_v20 = vmul.f32 %v494_v18, %v494_v18  ;;  %v509_v21 = vsub.f32 %v449_v52, %v494_v18  ;;  %v510_v22 = vsub.f32 %v450_v56, %v494_v18  ;;  %v1092_v52 = vld [vmem:[%s1416_s3 + $0x8] sm:$0xff]  }
 0x1af   : > { %v508_v23 = vsub.f32 %v506_v19, %v507_v20 }
 0x1b1   : > { %v511_v24 = vadd.f32 1e-05, %v508_v23 }
 0x1b3   : > { %1098 = vrsqrt.f32 %v511_v24 }
 0x1bd   : > { %v1099_v25 = vpop.eup %1098 }
 0x1be   : > { %v513_v26 = vmul.f32 %v1099_v25, %v509_v21  ;;  %v514_v27 = vmul.f32 %v1099_v25, %v510_v22 }
 0x1c0   : > { %v515_v28 = vmul.f32 %v513_v26, %v1275_v29  ;;  %v516_v31 = vmul.f32 %v514_v27, %v1278_v30 }
 0x1c2   : > { %v517_v32 = vmul.f32 %v515_v28, %v1275_v29  ;;  %v518_v33 = vmul.f32 %v516_v31, %v1278_v30 }
 0x1c4   : > { %v522_v34 = vrot.slane %v517_v32, 7  ;;  %v523_v35 = vrot.slane %v518_v33, 7 }
 0x1c6   : > { %v524_v36 = vsel %vm521_vm6, %v522_v34, %v523_v35  ;;  %v528_v37 = vsel %vm521_vm6, 0.0, %v522_v34  ;;  %v529_v38 = vsel %vm521_vm6, %v523_v35, 0.0 }
 0x1c7   : > { %v530_v39 = vpack.c.bf16 %v524_v36, %v528_v37  ;;  %v535_v40 = vpack.c.bf16 %v529_v38, %v529_v38 }
 0x1c9   : > { %v544_v41 = vshll.u32 %v530_v39, 16  ;;  %v549_v42 = vshll.u32 %v535_v40, 16  ;;  %v671_v43 = vrot.slane %v530_v39, 1  ;;  %v672_v44 = vrot.slane %v535_v40, 1 }
 0x1ca   : > { %v542_v45 = vshrl.u32 %v530_v39, 16 }
 0x1cb   : > { %v546_v46 = vrot.slane %v544_v41, 1  ;;  %v673_v47 = vsel %vm393_vm1, %v671_v43, %v672_v44  ;;  %v551_v49 = vrot.slane %v549_v42, 1 }
 0x1cd   : > { %v547_v48 = vor.u32 %v546_v46, %v542_v45 }
 0x1cf   : > { %v552_v51 = vsel %vm275_vm3, %v547_v48, %v551_v49 }
 0x1d0   : > { %995 = vmatmul.mubr.msk.bf16.vlgmr.msra.gmra.mrb[0].mxu1 %vm482_vm5, %v552_v51 }
 0x1d1   : > { %999 = vmatpush3.bf16.msra.mxu1 %v1091_v50  ;;  %1002 = vmatprep.mubr.msk.bf16.mxu1 %vm1168_vm0, %v1167_v5 }
 0x1d2   : > { %1000 = vmatprep.subr.bf16.mxu1 %v1167_v5 }
 0x1d5   : > { %1001 = vmatpush3.bf16.msra.mxu1 %v1092_v52 }
 0x1d6   : > { %1006 = vmatprep.subr.bf16.mxu1 %v1167_v5 }
 0x1dc   : > { %1003 = vmatmul.mubr.msk.bf16.vlgmr.msra.gmra.mrb[0].mxu1 %vm482_vm5, %v530_v39 }
 0x1dd   : > { %1007 = vmatpush3.bf16.msra.mxu1 %v1093_v53  ;;  %1010 = vmatprep.mubr.msk.bf16.mxu1 %vm1168_vm0, %v1167_v5 }
 0x1de   : > { %1008 = vmatprep.subr.bf16.mxu1 %v1167_v5 }
 0x1e1   : > { %1009 = vmatpush3.bf16.msra.mxu1 %v1094_v54 }
 0x1e8   : > { %1011 = vmatmul.mubr.msk.bf16.vlgmr.msra.gmra.mrb[0].mxu1 %vm482_vm5, %v673_v47 }
 0x2bb   : > { %v723_v56 = vpop.f32.mrb[0].mxu1 }
 0x2bc   : > { %v732_v57 = vmax.f32 %v723_v56, 0.0  ;;  %v1012_v58 = vpop.f32.mrb[1].mxu1 }
 0x2bd   : > { %v726_v59 = vpop.f32.mrb[2].mxu1 }
 0x2be   : > { %v734_v60 = vmul.f32 %v732_v57, %v1275_v29  ;;  %v733_v61 = vmax.f32 %v726_v59, 0.0  ;;  %v1013_v62 = vpop.f32.mrb[3].mxu1 }
 0x2c0   : > { %v746_v63 = vmul.f32 %v734_v60, %v734_v60  ;;  %v735_v0 = vmul.f32 %v733_v61, %v1278_v30  ;;  %v736_v5 = vsel %vm294_vm4, %v734_v60, 0.0 }
 0x2c2   : > { %v737_v1 = vsel %vm294_vm4, %v735_v0, 0.0  ;;  %v747_v2 = vmul.f32 %v735_v0, %v735_v0  ;;  %v748_v4 = vsel %vm294_vm4, %v746_v63, 0.0 }
 0x2c3   : > { %v738_v3 = vadd.f32 %v737_v1, %v736_v5 }
 0x2c4   : > { %v749_v6 = vsel %vm294_vm4, %v747_v2, 0.0 }
 0x2c5   : > { %v739_v7 = vrot.slane %v738_v3, 4  ;;  %v750_v8 = vadd.f32 %v749_v6, %v748_v4 }
 0x2c7   : > { %v740_v9 = vadd.f32 %v739_v7, %v738_v3  ;;  %v751_v10 = vrot.slane %v750_v8, 4 }
 0x2c9   : > { %v741_v11 = vrot.slane %v740_v9, 2  ;;  %v752_v12 = vadd.f32 %v751_v10, %v750_v8 }
 0x2cb   : > { %v742_v13 = vadd.f32 %v741_v11, %v740_v9  ;;  %v753_v14 = vrot.slane %v752_v12, 2 }
 0x2cd   : > { %v743_v15 = vrot.slane %v742_v13, 1  ;;  %v754_v17 = vadd.f32 %v753_v14, %v752_v12 }
 0x2cf   : > { %v744_v18 = vadd.f32 %v743_v15, %v742_v13  ;;  %v755_v19 = vrot.slane %v754_v17, 1 }
 0x2d1   : > { %v745_v20 = vmul.f32 %v1313_v16, %v744_v18  ;;  %v756_v21 = vadd.f32 %v755_v19, %v754_v17 }
 0x2d3   : > { %v757_v22 = vmul.f32 %v1313_v16, %v756_v21  ;;  %v758_v23 = vmul.f32 %v745_v20, %v745_v20  ;;  %v760_v24 = vsub.f32 %v732_v57, %v745_v20  ;;  %v761_v25 = vsub.f32 %v733_v61, %v745_v20 }
 0x2d5   : > { %v759_v26 = vsub.f32 %v757_v22, %v758_v23 }
 0x2d7   : > { %v762_v27 = vadd.f32 1e-05, %v759_v26 }
 0x2d9   : > { %1100 = vrsqrt.f32 %v762_v27 }
 0x2e3   : > { %v1101_v28 = vpop.eup %1100 }
 0x2e4   : > { %v764_v31 = vmul.f32 %v1101_v28, %v760_v24  ;;  %v765_v32 = vmul.f32 %v1101_v28, %v761_v25 }
 0x2e6   : > { %v766_v33 = vmul.f32 %v764_v31, %v1275_v29  ;;  %v767_v34 = vmul.f32 %v765_v32, %v1278_v30 }
 0x2e8   : > { %v768_v35 = vmul.f32 %v766_v33, %v1275_v29  ;;  %v769_v36 = vmul.f32 %v767_v34, %v1278_v30 }
 0x2ea   : > { %v770_v16 = vpack.c.bf16 %v769_v36, %v768_v35 }
 0x2ec   : > { %1017 = vmatmul.mubr.msk.bf16.vlgmr.msra.gmra.mrb[4].mxu0 %vm294_vm4, %v770_v16 }
 0x3bf   : > { %v816_v37 = vpop.f32.mrb[4].mxu0 }
 0x3c0   : > { %823 = vst.msk [vmem:[%s232_s6] sm:$0xff] %vm482_vm5, %v816_v37  ;;  %v1018_v29 = vpop.f32.mrb[5].mxu0 }
 0x3c1   : > { %v819_v30 = vpop.f32.mrb[6].mxu0 }
 0x3c2   : > { %824 = vst.msk [vmem:[%s232_s6 + $0x8] sm:$0xff] %vm482_vm5, %v819_v30  ;;  %v1019_v38 = vpop.f32.mrb[7].mxu0 }
 0x3c3   : > { %1115 = shalt.err (!%p1112_p3)
}
 0x3c4   : > { %s1116_s16 = scalar_lea.hbm %s1369_s11, 256  ;;  %s1120_s25 = scalar_lea.hbm %s1418_s5, 512 }
 0x3c5   : > { %p1117_p4 = scmp.ne.s32.totalorder %s1369_s11, %s1116_s16  ;;  %p1121_p9 = scmp.lt.u32.totalorder %s1369_s11, %s1418_s5 }
 0x3c6   : > { %p1122_p10 = scmp.lt.u32.totalorder %s1120_s25, %s1116_s16  ;;  %p1124_p12 = scmp.lt.u32.totalorder %s1116_s16, %s1369_s11 }
 0x3c7   : > { %p1118_p7 = pnand %p1117_p4, %p1241_p5 }
 0x3c8   : > { %p1123_p11 = por %p1122_p10, %p1121_p9 }
 0x3c9   : > { %p1119_p8 = pneg %p1118_p7 }
 0x3ca   : > { %p1125_p13 = por %p1124_p12, %p1123_p11 }
 0x3cc   : > { %p1126_p0 = pnand %p1125_p13, %p1119_p8 }
 0x3ce   : > { %1129 = shalt.err (!%p1126_p0)
}
 0x3cf   : > { %s1171_s6 = smov 128   ;;  %s1172_s8 = smov 8  }
 0x3d0   : > { %1039 = dma.vmem_to_hbm [thread:$0]  (%p1241_p5), %s1363_s7, 256, %s1369_s11, %s1372_s12, %s1171_s6, %s1171_s6, %s1172_s8  }
 0x3d1 PF: > { %p1045_p1 = scmp.ge.s32.totalorder %s1164_s21, 2  ;;  %s854_s9 = sand.u32 1, %s1152_s18  }
 0x3d2   : > { %s855_s10 = scalar_lea.sflag [#allocation3], %s854_s9 }
 0x3d3   : > { %p1042_p2 = pnand %p1045_p1, %p1245_p6 }
 0x3d5   : > { %1147 = dma.done.wait (!%p1042_p2), %s855_s10, 256  }
 0x3d6   : > { %1149 = vsyncadd (!%p1042_p2), %s855_s10, 4294967040  ;;  %p15_p3 = scmp.ge.s32.totalorder %s1228_s24, 4   ;;  %s1421_s18 = smov %s1156_s19 }
 0x3d7   : > { %s1422_s19 = smov %s1160_s20  ;;  %s1423_s20 = smov %s1239_s27 }
 0x3d8   : > { %s1424_s21 = smov %s1228_s24  ;;  %17 = sbr.rel (!%p15_p3) target bundleno = 3 (0x3), region = 82 }
 0x3df   :  { %860 = vsyncpa [#allocation3], 1 }
 0x3e0   :  { %862 = vsyncpa [#allocation3 + $0x1], 1 }

</bundles_post_ra>
